<compile_context>
chip_gen: v7x
topology: tpu7x:2x2x1
jax: 0.10.0
libtpu: 0.0.40
codegen_flags: <defaults>
</compile_context>

<pallas_src>
import math
import functools

import jax
import jax.numpy as jnp
from jax.experimental import pallas as pl
from jax.experimental.pallas import tpu as pltpu  # noqa: F401  (available for compiler params)

# ----------------------------- model dims ------------------------------------------------------
B = 2            # batch
S = 8            # sequence length
D = 32           # input_size / d_model
H = 4            # num_heads
DH = D // H      # head dim
HF = 64          # hidden_size (FFN dim)
NUM_LAYERS = 2
VOCAB = 50       # num_tokens
VOCAB_PAD = 128  # lane-dense decoder output width (sliced back to VOCAB in the wrapper)
LN_EPS = 1e-5
BS = B * S


# ----------------------------- fused Pallas kernel ---------------------------------------------
def fused_transformer_kernel(ids_ref, pe_ref, mask_ref, emb_ref,
                             win_ref, wo_ref, w1_ref, w2_ref, vec_ref,
                             wdec_ref, bdec_ref, o_ref,
                             *, num_heads, num_layers):
    """Entire forward pass for the flattened batch.

    ids:   (BS, 1)   int32 token ids
    pe:    (BS, D)   per-row positional encoding (already expanded with the batch-index quirk)
    mask:  (BS, BS)  block-diagonal additive attention mask (-inf across batches)
    emb:   (V, D)    embedding table
    win:   (L, D, 3D)   in_proj weights (pre-transposed)
    wo:    (L, H, DH, D) out_proj weights, split per head (pre-reshaped in wrapper)
    w1:    (L, D, HF)   FFN linear1 (pre-transposed)
    w2:    (L, HF, D)   FFN linear2 (pre-transposed)
    vec:   (L, 8, 3D)   packed small vectors: [bin, bo, g1, be1, b1, b2, g2, be2]
    wdec:  (D, VOCAB_PAD), bdec: (1, VOCAB_PAD)
    o:     (BS, VOCAB_PAD)
    """
    f32 = jnp.float32
    n_rows, d_model = pe_ref.shape
    dh = d_model // num_heads
    hidden = w1_ref.shape[-1]
    vocab = emb_ref.shape[0]
    scale = 1.0 / math.sqrt(dh)

    # ---- embedding gather (one-hot matmul) + sqrt(d_model) scale + positional encoding ----
    ids = ids_ref[...]                                                  # [BS, 1] int32
    vocab_iota = jax.lax.broadcasted_iota(jnp.int32, (n_rows, vocab), 1)
    onehot = (vocab_iota == ids).astype(f32)                            # [BS, V]
    x = jnp.dot(onehot, emb_ref[...], preferred_element_type=f32) * math.sqrt(d_model)
    x = x + pe_ref[...]                                                 # [BS, D]

    mask = mask_ref[...]                                                # [BS, BS]

    # ---- encoder layers (post-norm, ReLU FFN) ----
    for layer in range(num_layers):
        win = win_ref[layer]            # [D, 3D]
        wo_h = wo_ref[layer]            # [H, DH, D]
        w1 = w1_ref[layer]              # [D, HF]
        w2 = w2_ref[layer]              # [HF, D]
        vec = vec_ref[layer]            # [8, 3D]
        b_in = vec[0:1, :3 * d_model]
        bo   = vec[1:2, :d_model]
        g1   = vec[2:3, :d_model]
        be1  = vec[3:4, :d_model]
        b1   = vec[4:5, :hidden]
        b2   = vec[5:6, :d_model]
        g2   = vec[6:7, :d_model]
        be2  = vec[7:8, :d_model]

        # --- multi-head self-attention (heads batched in one einsum per matmul) ---
        qkv = jnp.dot(x, win, preferred_element_type=f32) + b_in        # [BS, 3D]
        q = qkv[:, 0 * d_model:1 * d_model]
        k = qkv[:, 1 * d_model:2 * d_model]
        v = qkv[:, 2 * d_model:3 * d_model]

        qh = jnp.stack([q[:, h * dh:(h + 1) * dh] for h in range(num_heads)], axis=0)  # [H,BS,DH]
        kh = jnp.stack([k[:, h * dh:(h + 1) * dh] for h in range(num_heads)], axis=0)
        vh = jnp.stack([v[:, h * dh:(h + 1) * dh] for h in range(num_heads)], axis=0)

        s = jnp.einsum('hqd,hkd->hqk', qh, kh, preferred_element_type=f32) * scale
        s = s + mask[None]                                              # block-diag causal mask
        s = s - jnp.max(s, axis=-1, keepdims=True)
        p = jnp.exp(s)
        p = p * pl.reciprocal(jnp.sum(p, axis=-1, keepdims=True), approx=True)
        o = jnp.einsum('hqk,hkd->hqd', p, vh, preferred_element_type=f32)       # [H, BS, DH]

        # per-head out-projection then sum over heads == concat(heads) @ Wo
        attn = jnp.einsum('hqd,hde->hqe', o, wo_h, preferred_element_type=f32)  # [H, BS, D]
        attn = jnp.sum(attn, axis=0) + bo                                       # [BS, D]

        # residual + LayerNorm1
        x = x + attn
        mu = jnp.mean(x, axis=-1, keepdims=True)
        var = jnp.mean((x - mu) ** 2, axis=-1, keepdims=True)
        x = (x - mu) * jax.lax.rsqrt(var + LN_EPS) * g1 + be1

        # --- feed-forward (ReLU) ---
        h1 = jnp.maximum(jnp.dot(x, w1, preferred_element_type=f32) + b1, 0.0)
        ff = jnp.dot(h1, w2, preferred_element_type=f32) + b2

        # residual + LayerNorm2
        x = x + ff
        mu = jnp.mean(x, axis=-1, keepdims=True)
        var = jnp.mean((x - mu) ** 2, axis=-1, keepdims=True)
        x = (x - mu) * jax.lax.rsqrt(var + LN_EPS) * g2 + be2

    # ---- lane-dense decoder: [BS, D] @ [D, VOCAB_PAD] ----
    o_ref[...] = jnp.dot(x, wdec_ref[...], preferred_element_type=f32) + bdec_ref[...]


# ----------------------------- wrapper ----------------------------------------------------------
def transformer_model_forward(params, src, src_mask, pe):
    b, s = src.shape
    bs = b * s

    ids2d = src.reshape(bs, 1).astype(jnp.int32)
    # PositionalEncoding quirk: x + pe[:x.size(0)] indexes the *batch* dim of the [L,1,D] table.
    pe_rows = jnp.repeat(pe[:b, 0, :], s, axis=0)                        # [BS, D]
    # Expand the [S,S] additive mask into a block-diagonal [BS,BS] mask (cross-batch = -inf).
    rix = jnp.arange(bs)
    same_batch = (rix[:, None] // s) == (rix[None, :] // s)
    bigmask = jnp.where(same_batch, jnp.tile(src_mask, (b, b)), -jnp.inf).astype(jnp.float32)

    kern = functools.partial(fused_transformer_kernel,
                             num_heads=H, num_layers=NUM_LAYERS)
    out_pad = pl.pallas_call(
        kern,
        out_shape=jax.ShapeDtypeStruct((bs, VOCAB_PAD), jnp.float32),
    )(ids2d, pe_rows, bigmask, params["emb"],
      params["win_all"], params["wo_heads_all"], params["w1_all"], params["w2_all"],
      params["vec_all"], params["wdec_pad"], params["bdec_pad"])

    return out_pad[:, :VOCAB].reshape(b, s, VOCAB)


# ----------------------------- parameter init ---------------------------------------------------
def init_params(key):
    keys = iter(jax.random.split(key, 2 + 4 * NUM_LAYERS))
    params = {}
    # Embedding: uniform(-0.1, 0.1) as in init_weights()
    params["emb"] = jax.random.uniform(next(keys), (VOCAB, D), jnp.float32, -0.1, 0.1)
    # Decoder Linear: weight uniform(-0.1, 0.1), bias zero; padded to lane-dense width.
    wdec = jax.random.uniform(next(keys), (D, VOCAB), jnp.float32, -0.1, 0.1)
    params["wdec_pad"] = jnp.zeros((D, VOCAB_PAD), jnp.float32).at[:, :VOCAB].set(wdec)
    params["bdec_pad"] = jnp.zeros((1, VOCAB_PAD), jnp.float32)

    win_l, wo_l, w1_l, w2_l, vec_l = [], [], [], [], []
    for _ in range(NUM_LAYERS):
        win = jax.random.uniform(next(keys), (D, 3 * D), jnp.float32, -0.1, 0.1)
        wo = jax.random.uniform(next(keys), (D, D), jnp.float32, -0.1, 0.1)
        w1 = jax.random.uniform(next(keys), (D, HF), jnp.float32, -0.1, 0.1)
        w2 = jax.random.uniform(next(keys), (HF, D), jnp.float32, -0.1, 0.1)
        win_l.append(win)
        wo_l.append(wo.reshape(H, DH, D))            # per-head split of out_proj (x @ Wo layout)
        w1_l.append(w1)
        w2_l.append(w2)
        # Packed small vectors: rows = [bin, bo, g1, be1, b1, b2, g2, be2], width 3D.
        vec = jnp.zeros((8, 3 * D), jnp.float32)
        vec = vec.at[2, :D].set(1.0)                 # LayerNorm1 gamma
        vec = vec.at[6, :D].set(1.0)                 # LayerNorm2 gamma
        vec_l.append(vec)

    params["win_all"] = jnp.stack(win_l, axis=0)         # (L, D, 3D)
    params["wo_heads_all"] = jnp.stack(wo_l, axis=0)     # (L, H, DH, D)
    params["w1_all"] = jnp.stack(w1_l, axis=0)           # (L, D, HF)
    params["w2_all"] = jnp.stack(w2_l, axis=0)           # (L, HF, D)
    params["vec_all"] = jnp.stack(vec_l, axis=0)         # (L, 8, 3D)
    return params


def positional_encoding_table(max_len, d_model):
    pos = jnp.arange(max_len, dtype=jnp.float32)[:, None]
    div = jnp.exp(jnp.arange(0, d_model, 2, dtype=jnp.float32)
                  * (-math.log(10000.0) / d_model))
    pe = jnp.zeros((max_len, d_model), jnp.float32)
    pe = pe.at[:, 0::2].set(jnp.sin(pos * div))
    pe = pe.at[:, 1::2].set(jnp.cos(pos * div))
    return pe[:, None, :]                                 # [L, 1, D]


def generate_square_subsequent_mask(sz):
    row = jnp.arange(sz)[:, None]
    col = jnp.arange(sz)[None, :]
    return jnp.where(col <= row, 0.0, -jnp.inf).astype(jnp.float32)


# ----------------------------- main --------------------------------------------------------------
if __name__ == "__main__":
    key = jax.random.PRNGKey(0)
    pkey, dkey = jax.random.split(key)
    params = init_params(pkey)
    pe = positional_encoding_table(64, D)

    src = jax.random.randint(dkey, (B, S), 0, VOCAB, dtype=jnp.int32)   # token ids
    src_mask = generate_square_subsequent_mask(S)                       # [S, S] additive mask

    out = transformer_model_forward(params, src, src_mask, pe)
    jax.block_until_ready(out)
    assert out.shape == (B, S, VOCAB), out.shape
    assert bool(jnp.all(jnp.isfinite(out)))
    print("KERNEL_OK")
</pallas_src>

<mosaic_0001>
module attributes {stable_mosaic.version = 11 : i64} {
  func.func @fused_transformer_kernel(%arg0: memref<16x1xi32, #tpu.memory_space<vmem>>, %arg1: memref<16x32xf32, #tpu.memory_space<vmem>>, %arg2: memref<16x16xf32, #tpu.memory_space<vmem>>, %arg3: memref<50x32xf32, #tpu.memory_space<vmem>>, %arg4: memref<2x32x96xf32, #tpu.memory_space<vmem>>, %arg5: memref<2x4x8x32xf32, #tpu.memory_space<vmem>>, %arg6: memref<2x32x64xf32, #tpu.memory_space<vmem>>, %arg7: memref<2x64x32xf32, #tpu.memory_space<vmem>>, %arg8: memref<2x8x96xf32, #tpu.memory_space<vmem>>, %arg9: memref<32x128xf32, #tpu.memory_space<vmem>>, %arg10: memref<1x128xf32, #tpu.memory_space<vmem>>, %arg11: memref<16x128xf32, #tpu.memory_space<vmem>>) attributes {dimension_semantics = [], scalar_prefetch = 0 : i64, scratch_operands = 0 : i64, tpu.core_type = #tpu.core_type<tc>} {
    %c0 = arith.constant 0 : index
    %c0_0 = arith.constant 0 : index
    %0 = vector.load %arg0[%c0, %c0_0] : memref<16x1xi32, #tpu.memory_space<vmem>>, vector<16x1xi32>
    %1 = tpu.iota {dimensions = array<i32: 1>} : vector<16x50xi32>
    %2 = vector.broadcast %0 : vector<16x1xi32> to vector<16x50xi32>
    %3 = arith.cmpi eq, %1, %2 : vector<16x50xi32>
    %4 = arith.extui %3 : vector<16x50xi1> to vector<16x50xi32>
    %5 = arith.sitofp %4 : vector<16x50xi32> to vector<16x50xf32>
    %c0_1 = arith.constant 0 : index
    %c0_2 = arith.constant 0 : index
    %6 = vector.load %arg3[%c0_1, %c0_2] : memref<50x32xf32, #tpu.memory_space<vmem>>, vector<50x32xf32>
    %cst = arith.constant dense<0.000000e+00> : vector<16x32xf32>
    %7 = tpu.matmul %5, %6, %cst {dimension_numbers = #tpu.dot_dimension_numbers<[1], [0], [0], [1], [0, 0, 1, 1], [], []>} : vector<16x50xf32>, vector<50x32xf32>, vector<16x32xf32> -> vector<16x32xf32>
    %cst_3 = arith.constant 5.65685415 : f32
    %8 = vector.broadcast %cst_3 : f32 to vector<16x32xf32>
    %9 = arith.mulf %7, %8 : vector<16x32xf32>
    %c0_4 = arith.constant 0 : index
    %c0_5 = arith.constant 0 : index
    %10 = vector.load %arg1[%c0_4, %c0_5] : memref<16x32xf32, #tpu.memory_space<vmem>>, vector<16x32xf32>
    %11 = arith.addf %9, %10 : vector<16x32xf32>
    %c0_6 = arith.constant 0 : index
    %c0_7 = arith.constant 0 : index
    %12 = vector.load %arg2[%c0_6, %c0_7] : memref<16x16xf32, #tpu.memory_space<vmem>>, vector<16x16xf32>
    %c0_8 = arith.constant 0 : index
    %c0_9 = arith.constant 0 : index
    %c0_10 = arith.constant 0 : index
    %13 = vector.load %arg4[%c0_8, %c0_9, %c0_10] : memref<2x32x96xf32, #tpu.memory_space<vmem>>, vector<1x32x96xf32>
    %14 = vector.shape_cast %13 : vector<1x32x96xf32> to vector<32x96xf32>
    %c0_11 = arith.constant 0 : index
    %c0_12 = arith.constant 0 : index
    %c0_13 = arith.constant 0 : index
    %c0_14 = arith.constant 0 : index
    %15 = vector.load %arg5[%c0_11, %c0_12, %c0_13, %c0_14] : memref<2x4x8x32xf32, #tpu.memory_space<vmem>>, vector<1x4x8x32xf32>
    %16 = vector.shape_cast %15 : vector<1x4x8x32xf32> to vector<4x8x32xf32>
    %c0_15 = arith.constant 0 : index
    %c0_16 = arith.constant 0 : index
    %c0_17 = arith.constant 0 : index
    %17 = vector.load %arg6[%c0_15, %c0_16, %c0_17] : memref<2x32x64xf32, #tpu.memory_space<vmem>>, vector<1x32x64xf32>
    %18 = vector.shape_cast %17 : vector<1x32x64xf32> to vector<32x64xf32>
    %c0_18 = arith.constant 0 : index
    %c0_19 = arith.constant 0 : index
    %c0_20 = arith.constant 0 : index
    %19 = vector.load %arg7[%c0_18, %c0_19, %c0_20] : memref<2x64x32xf32, #tpu.memory_space<vmem>>, vector<1x64x32xf32>
    %20 = vector.shape_cast %19 : vector<1x64x32xf32> to vector<64x32xf32>
    %c0_21 = arith.constant 0 : index
    %c0_22 = arith.constant 0 : index
    %c0_23 = arith.constant 0 : index
    %21 = vector.load %arg8[%c0_21, %c0_22, %c0_23] : memref<2x8x96xf32, #tpu.memory_space<vmem>>, vector<1x8x96xf32>
    %22 = vector.shape_cast %21 : vector<1x8x96xf32> to vector<8x96xf32>
    %23 = vector.extract_strided_slice %22 {offsets = [0, 0], sizes = [1, 96], strides = [1, 1]} : vector<8x96xf32> to vector<1x96xf32>
    %24 = vector.extract_strided_slice %22 {offsets = [1, 0], sizes = [1, 32], strides = [1, 1]} : vector<8x96xf32> to vector<1x32xf32>
    %25 = vector.extract_strided_slice %22 {offsets = [2, 0], sizes = [1, 32], strides = [1, 1]} : vector<8x96xf32> to vector<1x32xf32>
    %26 = vector.extract_strided_slice %22 {offsets = [3, 0], sizes = [1, 32], strides = [1, 1]} : vector<8x96xf32> to vector<1x32xf32>
    %27 = vector.extract_strided_slice %22 {offsets = [4, 0], sizes = [1, 64], strides = [1, 1]} : vector<8x96xf32> to vector<1x64xf32>
    %28 = vector.extract_strided_slice %22 {offsets = [5, 0], sizes = [1, 32], strides = [1, 1]} : vector<8x96xf32> to vector<1x32xf32>
    %29 = vector.extract_strided_slice %22 {offsets = [6, 0], sizes = [1, 32], strides = [1, 1]} : vector<8x96xf32> to vector<1x32xf32>
    %30 = vector.extract_strided_slice %22 {offsets = [7, 0], sizes = [1, 32], strides = [1, 1]} : vector<8x96xf32> to vector<1x32xf32>
    %cst_24 = arith.constant dense<0.000000e+00> : vector<16x96xf32>
    %31 = tpu.matmul %11, %14, %cst_24 {dimension_numbers = #tpu.dot_dimension_numbers<[1], [0], [0], [1], [0, 0, 1, 1], [], []>} : vector<16x32xf32>, vector<32x96xf32>, vector<16x96xf32> -> vector<16x96xf32>
    %32 = vector.broadcast %23 : vector<1x96xf32> to vector<16x96xf32>
    %33 = arith.addf %31, %32 : vector<16x96xf32>
    %34 = vector.extract_strided_slice %33 {offsets = [0, 0], sizes = [16, 32], strides = [1, 1]} : vector<16x96xf32> to vector<16x32xf32>
    %35 = vector.extract_strided_slice %33 {offsets = [0, 32], sizes = [16, 32], strides = [1, 1]} : vector<16x96xf32> to vector<16x32xf32>
    %36 = vector.extract_strided_slice %33 {offsets = [0, 64], sizes = [16, 32], strides = [1, 1]} : vector<16x96xf32> to vector<16x32xf32>
    %37 = vector.extract_strided_slice %34 {offsets = [0, 0], sizes = [16, 8], strides = [1, 1]} : vector<16x32xf32> to vector<16x8xf32>
    %38 = vector.extract_strided_slice %34 {offsets = [0, 8], sizes = [16, 8], strides = [1, 1]} : vector<16x32xf32> to vector<16x8xf32>
    %39 = vector.extract_strided_slice %34 {offsets = [0, 16], sizes = [16, 8], strides = [1, 1]} : vector<16x32xf32> to vector<16x8xf32>
    %40 = vector.extract_strided_slice %34 {offsets = [0, 24], sizes = [16, 8], strides = [1, 1]} : vector<16x32xf32> to vector<16x8xf32>
    %41 = vector.shape_cast %37 : vector<16x8xf32> to vector<1x16x8xf32>
    %42 = vector.shape_cast %38 : vector<16x8xf32> to vector<1x16x8xf32>
    %43 = vector.shape_cast %39 : vector<16x8xf32> to vector<1x16x8xf32>
    %44 = vector.shape_cast %40 : vector<16x8xf32> to vector<1x16x8xf32>
    %45 = tpu.concatenate %41, %42, %43, %44 in 0 : vector<1x16x8xf32>, vector<1x16x8xf32>, vector<1x16x8xf32>, vector<1x16x8xf32> -> vector<4x16x8xf32>
    %46 = vector.extract_strided_slice %35 {offsets = [0, 0], sizes = [16, 8], strides = [1, 1]} : vector<16x32xf32> to vector<16x8xf32>
    %47 = vector.extract_strided_slice %35 {offsets = [0, 8], sizes = [16, 8], strides = [1, 1]} : vector<16x32xf32> to vector<16x8xf32>
    %48 = vector.extract_strided_slice %35 {offsets = [0, 16], sizes = [16, 8], strides = [1, 1]} : vector<16x32xf32> to vector<16x8xf32>
    %49 = vector.extract_strided_slice %35 {offsets = [0, 24], sizes = [16, 8], strides = [1, 1]} : vector<16x32xf32> to vector<16x8xf32>
    %50 = vector.shape_cast %46 : vector<16x8xf32> to vector<1x16x8xf32>
    %51 = vector.shape_cast %47 : vector<16x8xf32> to vector<1x16x8xf32>
    %52 = vector.shape_cast %48 : vector<16x8xf32> to vector<1x16x8xf32>
    %53 = vector.shape_cast %49 : vector<16x8xf32> to vector<1x16x8xf32>
    %54 = tpu.concatenate %50, %51, %52, %53 in 0 : vector<1x16x8xf32>, vector<1x16x8xf32>, vector<1x16x8xf32>, vector<1x16x8xf32> -> vector<4x16x8xf32>
    %55 = vector.extract_strided_slice %36 {offsets = [0, 0], sizes = [16, 8], strides = [1, 1]} : vector<16x32xf32> to vector<16x8xf32>
    %56 = vector.extract_strided_slice %36 {offsets = [0, 8], sizes = [16, 8], strides = [1, 1]} : vector<16x32xf32> to vector<16x8xf32>
    %57 = vector.extract_strided_slice %36 {offsets = [0, 16], sizes = [16, 8], strides = [1, 1]} : vector<16x32xf32> to vector<16x8xf32>
    %58 = vector.extract_strided_slice %36 {offsets = [0, 24], sizes = [16, 8], strides = [1, 1]} : vector<16x32xf32> to vector<16x8xf32>
    %59 = vector.shape_cast %55 : vector<16x8xf32> to vector<1x16x8xf32>
    %60 = vector.shape_cast %56 : vector<16x8xf32> to vector<1x16x8xf32>
    %61 = vector.shape_cast %57 : vector<16x8xf32> to vector<1x16x8xf32>
    %62 = vector.shape_cast %58 : vector<16x8xf32> to vector<1x16x8xf32>
    %63 = tpu.concatenate %59, %60, %61, %62 in 0 : vector<1x16x8xf32>, vector<1x16x8xf32>, vector<1x16x8xf32>, vector<1x16x8xf32> -> vector<4x16x8xf32>
    "tpu.trace_start"() <{level = 10 : i32, message = "hqd,hkd->hqk"}> : () -> ()
    %cst_25 = arith.constant dense<0.000000e+00> : vector<4x16x16xf32>
    %64 = tpu.matmul %45, %54, %cst_25 {dimension_numbers = #tpu.dot_dimension_numbers<[2], [2], [1], [1], [0, 0, 0, 1, 1, 1], [0], [0]>} : vector<4x16x8xf32>, vector<4x16x8xf32>, vector<4x16x16xf32> -> vector<4x16x16xf32>
    "tpu.trace_stop"() : () -> ()
    %cst_26 = arith.constant 0.353553385 : f32
    %65 = vector.broadcast %cst_26 : f32 to vector<4x16x16xf32>
    %66 = arith.mulf %64, %65 : vector<4x16x16xf32>
    %67 = vector.shape_cast %12 : vector<16x16xf32> to vector<1x16x16xf32>
    %68 = vector.broadcast %67 : vector<1x16x16xf32> to vector<4x16x16xf32>
    %69 = arith.addf %66, %68 : vector<4x16x16xf32>
    %cst_27 = arith.constant dense<0xFF800000> : vector<4x16xf32>
    %70 = vector.multi_reduction <maximumf>, %69, %cst_27 [2] : vector<4x16x16xf32> to vector<4x16xf32>
    %71 = vector.shape_cast %70 : vector<4x16xf32> to vector<4x16x1xf32>
    %72 = vector.broadcast %71 : vector<4x16x1xf32> to vector<4x16x16xf32>
    %73 = arith.subf %69, %72 : vector<4x16x16xf32>
    %74 = math.exp %73 : vector<4x16x16xf32>
    %cst_28 = arith.constant dense<0.000000e+00> : vector<4x16xf32>
    %75 = vector.multi_reduction <add>, %74, %cst_28 [2] : vector<4x16x16xf32> to vector<4x16xf32>
    %76 = vector.shape_cast %75 : vector<4x16xf32> to vector<4x16x1xf32>
    %77 = tpu.reciprocal %76 {approx = true} : vector<4x16x1xf32> -> vector<4x16x1xf32>
    %78 = vector.broadcast %77 : vector<4x16x1xf32> to vector<4x16x16xf32>
    %79 = arith.mulf %74, %78 : vector<4x16x16xf32>
    "tpu.trace_start"() <{level = 10 : i32, message = "hqk,hkd->hqd"}> : () -> ()
    %cst_29 = arith.constant dense<0.000000e+00> : vector<4x16x8xf32>
    %80 = tpu.matmul %79, %63, %cst_29 {dimension_numbers = #tpu.dot_dimension_numbers<[2], [1], [1], [2], [0, 0, 0, 1, 1, 2], [0], [0]>} : vector<4x16x16xf32>, vector<4x16x8xf32>, vector<4x16x8xf32> -> vector<4x16x8xf32>
    "tpu.trace_stop"() : () -> ()
    "tpu.trace_start"() <{level = 10 : i32, message = "hqd,hde->hqe"}> : () -> ()
    %cst_30 = arith.constant dense<0.000000e+00> : vector<4x16x32xf32>
    %81 = tpu.matmul %80, %16, %cst_30 {dimension_numbers = #tpu.dot_dimension_numbers<[2], [1], [1], [2], [0, 0, 0, 1, 1, 2], [0], [0]>} : vector<4x16x8xf32>, vector<4x8x32xf32>, vector<4x16x32xf32> -> vector<4x16x32xf32>
    "tpu.trace_stop"() : () -> ()
    %cst_31 = arith.constant dense<0.000000e+00> : vector<16x32xf32>
    %82 = vector.multi_reduction <add>, %81, %cst_31 [0] : vector<4x16x32xf32> to vector<16x32xf32>
    %83 = vector.broadcast %24 : vector<1x32xf32> to vector<16x32xf32>
    %84 = arith.addf %82, %83 : vector<16x32xf32>
    %85 = arith.addf %11, %84 : vector<16x32xf32>
    %cst_32 = arith.constant dense<0.000000e+00> : vector<16xf32>
    %86 = vector.multi_reduction <add>, %85, %cst_32 [1] : vector<16x32xf32> to vector<16xf32>
    %87 = vector.shape_cast %86 : vector<16xf32> to vector<16x1xf32>
    %cst_33 = arith.constant 3.200000e+01 : f32
    %88 = vector.broadcast %cst_33 : f32 to vector<16x1xf32>
    %89 = arith.divf %87, %88 : vector<16x1xf32>
    %90 = vector.broadcast %89 : vector<16x1xf32> to vector<16x32xf32>
    %91 = arith.subf %85, %90 : vector<16x32xf32>
    %92 = arith.mulf %91, %91 : vector<16x32xf32>
    %cst_34 = arith.constant dense<0.000000e+00> : vector<16xf32>
    %93 = vector.multi_reduction <add>, %92, %cst_34 [1] : vector<16x32xf32> to vector<16xf32>
    %94 = vector.shape_cast %93 : vector<16xf32> to vector<16x1xf32>
    %cst_35 = arith.constant 3.200000e+01 : f32
    %95 = vector.broadcast %cst_35 : f32 to vector<16x1xf32>
    %96 = arith.divf %94, %95 : vector<16x1xf32>
    %97 = vector.broadcast %89 : vector<16x1xf32> to vector<16x32xf32>
    %98 = arith.subf %85, %97 : vector<16x32xf32>
    %cst_36 = arith.constant 9.99999974E-6 : f32
    %99 = vector.broadcast %cst_36 : f32 to vector<16x1xf32>
    %100 = arith.addf %96, %99 : vector<16x1xf32>
    %101 = math.rsqrt %100 : vector<16x1xf32>
    %102 = vector.broadcast %101 : vector<16x1xf32> to vector<16x32xf32>
    %103 = arith.mulf %98, %102 : vector<16x32xf32>
    %104 = vector.broadcast %25 : vector<1x32xf32> to vector<16x32xf32>
    %105 = arith.mulf %103, %104 : vector<16x32xf32>
    %106 = vector.broadcast %26 : vector<1x32xf32> to vector<16x32xf32>
    %107 = arith.addf %105, %106 : vector<16x32xf32>
    %cst_37 = arith.constant dense<0.000000e+00> : vector<16x64xf32>
    %108 = tpu.matmul %107, %18, %cst_37 {dimension_numbers = #tpu.dot_dimension_numbers<[1], [0], [0], [1], [0, 0, 1, 1], [], []>} : vector<16x32xf32>, vector<32x64xf32>, vector<16x64xf32> -> vector<16x64xf32>
    %109 = vector.broadcast %27 : vector<1x64xf32> to vector<16x64xf32>
    %110 = arith.addf %108, %109 : vector<16x64xf32>
    %cst_38 = arith.constant 0.000000e+00 : f32
    %111 = vector.broadcast %cst_38 : f32 to vector<16x64xf32>
    %112 = arith.maximumf %110, %111 : vector<16x64xf32>
    %cst_39 = arith.constant dense<0.000000e+00> : vector<16x32xf32>
    %113 = tpu.matmul %112, %20, %cst_39 {dimension_numbers = #tpu.dot_dimension_numbers<[1], [0], [0], [1], [0, 0, 1, 1], [], []>} : vector<16x64xf32>, vector<64x32xf32>, vector<16x32xf32> -> vector<16x32xf32>
    %114 = vector.broadcast %28 : vector<1x32xf32> to vector<16x32xf32>
    %115 = arith.addf %113, %114 : vector<16x32xf32>
    %116 = arith.addf %107, %115 : vector<16x32xf32>
    %cst_40 = arith.constant dense<0.000000e+00> : vector<16xf32>
    %117 = vector.multi_reduction <add>, %116, %cst_40 [1] : vector<16x32xf32> to vector<16xf32>
    %118 = vector.shape_cast %117 : vector<16xf32> to vector<16x1xf32>
    %cst_41 = arith.constant 3.200000e+01 : f32
    %119 = vector.broadcast %cst_41 : f32 to vector<16x1xf32>
    %120 = arith.divf %118, %119 : vector<16x1xf32>
    %121 = vector.broadcast %120 : vector<16x1xf32> to vector<16x32xf32>
    %122 = arith.subf %116, %121 : vector<16x32xf32>
    %123 = arith.mulf %122, %122 : vector<16x32xf32>
    %cst_42 = arith.constant dense<0.000000e+00> : vector<16xf32>
    %124 = vector.multi_reduction <add>, %123, %cst_42 [1] : vector<16x32xf32> to vector<16xf32>
    %125 = vector.shape_cast %124 : vector<16xf32> to vector<16x1xf32>
    %cst_43 = arith.constant 3.200000e+01 : f32
    %126 = vector.broadcast %cst_43 : f32 to vector<16x1xf32>
    %127 = arith.divf %125, %126 : vector<16x1xf32>
    %128 = vector.broadcast %120 : vector<16x1xf32> to vector<16x32xf32>
    %129 = arith.subf %116, %128 : vector<16x32xf32>
    %cst_44 = arith.constant 9.99999974E-6 : f32
    %130 = vector.broadcast %cst_44 : f32 to vector<16x1xf32>
    %131 = arith.addf %127, %130 : vector<16x1xf32>
    %132 = math.rsqrt %131 : vector<16x1xf32>
    %133 = vector.broadcast %132 : vector<16x1xf32> to vector<16x32xf32>
    %134 = arith.mulf %129, %133 : vector<16x32xf32>
    %135 = vector.broadcast %29 : vector<1x32xf32> to vector<16x32xf32>
    %136 = arith.mulf %134, %135 : vector<16x32xf32>
    %137 = vector.broadcast %30 : vector<1x32xf32> to vector<16x32xf32>
    %138 = arith.addf %136, %137 : vector<16x32xf32>
    %c1 = arith.constant 1 : index
    %c0_45 = arith.constant 0 : index
    %c0_46 = arith.constant 0 : index
    %139 = vector.load %arg4[%c1, %c0_45, %c0_46] : memref<2x32x96xf32, #tpu.memory_space<vmem>>, vector<1x32x96xf32>
    %140 = vector.shape_cast %139 : vector<1x32x96xf32> to vector<32x96xf32>
    %c1_47 = arith.constant 1 : index
    %c0_48 = arith.constant 0 : index
    %c0_49 = arith.constant 0 : index
    %c0_50 = arith.constant 0 : index
    %141 = vector.load %arg5[%c1_47, %c0_48, %c0_49, %c0_50] : memref<2x4x8x32xf32, #tpu.memory_space<vmem>>, vector<1x4x8x32xf32>
    %142 = vector.shape_cast %141 : vector<1x4x8x32xf32> to vector<4x8x32xf32>
    %c1_51 = arith.constant 1 : index
    %c0_52 = arith.constant 0 : index
    %c0_53 = arith.constant 0 : index
    %143 = vector.load %arg6[%c1_51, %c0_52, %c0_53] : memref<2x32x64xf32, #tpu.memory_space<vmem>>, vector<1x32x64xf32>
    %144 = vector.shape_cast %143 : vector<1x32x64xf32> to vector<32x64xf32>
    %c1_54 = arith.constant 1 : index
    %c0_55 = arith.constant 0 : index
    %c0_56 = arith.constant 0 : index
    %145 = vector.load %arg7[%c1_54, %c0_55, %c0_56] : memref<2x64x32xf32, #tpu.memory_space<vmem>>, vector<1x64x32xf32>
    %146 = vector.shape_cast %145 : vector<1x64x32xf32> to vector<64x32xf32>
    %c1_57 = arith.constant 1 : index
    %c0_58 = arith.constant 0 : index
    %c0_59 = arith.constant 0 : index
    %147 = vector.load %arg8[%c1_57, %c0_58, %c0_59] : memref<2x8x96xf32, #tpu.memory_space<vmem>>, vector<1x8x96xf32>
    %148 = vector.shape_cast %147 : vector<1x8x96xf32> to vector<8x96xf32>
    %149 = vector.extract_strided_slice %148 {offsets = [0, 0], sizes = [1, 96], strides = [1, 1]} : vector<8x96xf32> to vector<1x96xf32>
    %150 = vector.extract_strided_slice %148 {offsets = [1, 0], sizes = [1, 32], strides = [1, 1]} : vector<8x96xf32> to vector<1x32xf32>
    %151 = vector.extract_strided_slice %148 {offsets = [2, 0], sizes = [1, 32], strides = [1, 1]} : vector<8x96xf32> to vector<1x32xf32>
    %152 = vector.extract_strided_slice %148 {offsets = [3, 0], sizes = [1, 32], strides = [1, 1]} : vector<8x96xf32> to vector<1x32xf32>
    %153 = vector.extract_strided_slice %148 {offsets = [4, 0], sizes = [1, 64], strides = [1, 1]} : vector<8x96xf32> to vector<1x64xf32>
    %154 = vector.extract_strided_slice %148 {offsets = [5, 0], sizes = [1, 32], strides = [1, 1]} : vector<8x96xf32> to vector<1x32xf32>
    %155 = vector.extract_strided_slice %148 {offsets = [6, 0], sizes = [1, 32], strides = [1, 1]} : vector<8x96xf32> to vector<1x32xf32>
    %156 = vector.extract_strided_slice %148 {offsets = [7, 0], sizes = [1, 32], strides = [1, 1]} : vector<8x96xf32> to vector<1x32xf32>
    %cst_60 = arith.constant dense<0.000000e+00> : vector<16x96xf32>
    %157 = tpu.matmul %138, %140, %cst_60 {dimension_numbers = #tpu.dot_dimension_numbers<[1], [0], [0], [1], [0, 0, 1, 1], [], []>} : vector<16x32xf32>, vector<32x96xf32>, vector<16x96xf32> -> vector<16x96xf32>
    %158 = vector.broadcast %149 : vector<1x96xf32> to vector<16x96xf32>
    %159 = arith.addf %157, %158 : vector<16x96xf32>
    %160 = vector.extract_strided_slice %159 {offsets = [0, 0], sizes = [16, 32], strides = [1, 1]} : vector<16x96xf32> to vector<16x32xf32>
    %161 = vector.extract_strided_slice %159 {offsets = [0, 32], sizes = [16, 32], strides = [1, 1]} : vector<16x96xf32> to vector<16x32xf32>
    %162 = vector.extract_strided_slice %159 {offsets = [0, 64], sizes = [16, 32], strides = [1, 1]} : vector<16x96xf32> to vector<16x32xf32>
    %163 = vector.extract_strided_slice %160 {offsets = [0, 0], sizes = [16, 8], strides = [1, 1]} : vector<16x32xf32> to vector<16x8xf32>
    %164 = vector.extract_strided_slice %160 {offsets = [0, 8], sizes = [16, 8], strides = [1, 1]} : vector<16x32xf32> to vector<16x8xf32>
    %165 = vector.extract_strided_slice %160 {offsets = [0, 16], sizes = [16, 8], strides = [1, 1]} : vector<16x32xf32> to vector<16x8xf32>
    %166 = vector.extract_strided_slice %160 {offsets = [0, 24], sizes = [16, 8], strides = [1, 1]} : vector<16x32xf32> to vector<16x8xf32>
    %167 = vector.shape_cast %163 : vector<16x8xf32> to vector<1x16x8xf32>
    %168 = vector.shape_cast %164 : vector<16x8xf32> to vector<1x16x8xf32>
    %169 = vector.shape_cast %165 : vector<16x8xf32> to vector<1x16x8xf32>
    %170 = vector.shape_cast %166 : vector<16x8xf32> to vector<1x16x8xf32>
    %171 = tpu.concatenate %167, %168, %169, %170 in 0 : vector<1x16x8xf32>, vector<1x16x8xf32>, vector<1x16x8xf32>, vector<1x16x8xf32> -> vector<4x16x8xf32>
    %172 = vector.extract_strided_slice %161 {offsets = [0, 0], sizes = [16, 8], strides = [1, 1]} : vector<16x32xf32> to vector<16x8xf32>
    %173 = vector.extract_strided_slice %161 {offsets = [0, 8], sizes = [16, 8], strides = [1, 1]} : vector<16x32xf32> to vector<16x8xf32>
    %174 = vector.extract_strided_slice %161 {offsets = [0, 16], sizes = [16, 8], strides = [1, 1]} : vector<16x32xf32> to vector<16x8xf32>
    %175 = vector.extract_strided_slice %161 {offsets = [0, 24], sizes = [16, 8], strides = [1, 1]} : vector<16x32xf32> to vector<16x8xf32>
    %176 = vector.shape_cast %172 : vector<16x8xf32> to vector<1x16x8xf32>
    %177 = vector.shape_cast %173 : vector<16x8xf32> to vector<1x16x8xf32>
    %178 = vector.shape_cast %174 : vector<16x8xf32> to vector<1x16x8xf32>
    %179 = vector.shape_cast %175 : vector<16x8xf32> to vector<1x16x8xf32>
    %180 = tpu.concatenate %176, %177, %178, %179 in 0 : vector<1x16x8xf32>, vector<1x16x8xf32>, vector<1x16x8xf32>, vector<1x16x8xf32> -> vector<4x16x8xf32>
    %181 = vector.extract_strided_slice %162 {offsets = [0, 0], sizes = [16, 8], strides = [1, 1]} : vector<16x32xf32> to vector<16x8xf32>
    %182 = vector.extract_strided_slice %162 {offsets = [0, 8], sizes = [16, 8], strides = [1, 1]} : vector<16x32xf32> to vector<16x8xf32>
    %183 = vector.extract_strided_slice %162 {offsets = [0, 16], sizes = [16, 8], strides = [1, 1]} : vector<16x32xf32> to vector<16x8xf32>
    %184 = vector.extract_strided_slice %162 {offsets = [0, 24], sizes = [16, 8], strides = [1, 1]} : vector<16x32xf32> to vector<16x8xf32>
    %185 = vector.shape_cast %181 : vector<16x8xf32> to vector<1x16x8xf32>
    %186 = vector.shape_cast %182 : vector<16x8xf32> to vector<1x16x8xf32>
    %187 = vector.shape_cast %183 : vector<16x8xf32> to vector<1x16x8xf32>
    %188 = vector.shape_cast %184 : vector<16x8xf32> to vector<1x16x8xf32>
    %189 = tpu.concatenate %185, %186, %187, %188 in 0 : vector<1x16x8xf32>, vector<1x16x8xf32>, vector<1x16x8xf32>, vector<1x16x8xf32> -> vector<4x16x8xf32>
    "tpu.trace_start"() <{level = 10 : i32, message = "hqd,hkd->hqk"}> : () -> ()
    %cst_61 = arith.constant dense<0.000000e+00> : vector<4x16x16xf32>
    %190 = tpu.matmul %171, %180, %cst_61 {dimension_numbers = #tpu.dot_dimension_numbers<[2], [2], [1], [1], [0, 0, 0, 1, 1, 1], [0], [0]>} : vector<4x16x8xf32>, vector<4x16x8xf32>, vector<4x16x16xf32> -> vector<4x16x16xf32>
    "tpu.trace_stop"() : () -> ()
    %cst_62 = arith.constant 0.353553385 : f32
    %191 = vector.broadcast %cst_62 : f32 to vector<4x16x16xf32>
    %192 = arith.mulf %190, %191 : vector<4x16x16xf32>
    %193 = vector.shape_cast %12 : vector<16x16xf32> to vector<1x16x16xf32>
    %194 = vector.broadcast %193 : vector<1x16x16xf32> to vector<4x16x16xf32>
    %195 = arith.addf %192, %194 : vector<4x16x16xf32>
    %cst_63 = arith.constant dense<0xFF800000> : vector<4x16xf32>
    %196 = vector.multi_reduction <maximumf>, %195, %cst_63 [2] : vector<4x16x16xf32> to vector<4x16xf32>
    %197 = vector.shape_cast %196 : vector<4x16xf32> to vector<4x16x1xf32>
    %198 = vector.broadcast %197 : vector<4x16x1xf32> to vector<4x16x16xf32>
    %199 = arith.subf %195, %198 : vector<4x16x16xf32>
    %200 = math.exp %199 : vector<4x16x16xf32>
    %cst_64 = arith.constant dense<0.000000e+00> : vector<4x16xf32>
    %201 = vector.multi_reduction <add>, %200, %cst_64 [2] : vector<4x16x16xf32> to vector<4x16xf32>
    %202 = vector.shape_cast %201 : vector<4x16xf32> to vector<4x16x1xf32>
    %203 = tpu.reciprocal %202 {approx = true} : vector<4x16x1xf32> -> vector<4x16x1xf32>
    %204 = vector.broadcast %203 : vector<4x16x1xf32> to vector<4x16x16xf32>
    %205 = arith.mulf %200, %204 : vector<4x16x16xf32>
    "tpu.trace_start"() <{level = 10 : i32, message = "hqk,hkd->hqd"}> : () -> ()
    %cst_65 = arith.constant dense<0.000000e+00> : vector<4x16x8xf32>
    %206 = tpu.matmul %205, %189, %cst_65 {dimension_numbers = #tpu.dot_dimension_numbers<[2], [1], [1], [2], [0, 0, 0, 1, 1, 2], [0], [0]>} : vector<4x16x16xf32>, vector<4x16x8xf32>, vector<4x16x8xf32> -> vector<4x16x8xf32>
    "tpu.trace_stop"() : () -> ()
    "tpu.trace_start"() <{level = 10 : i32, message = "hqd,hde->hqe"}> : () -> ()
    %cst_66 = arith.constant dense<0.000000e+00> : vector<4x16x32xf32>
    %207 = tpu.matmul %206, %142, %cst_66 {dimension_numbers = #tpu.dot_dimension_numbers<[2], [1], [1], [2], [0, 0, 0, 1, 1, 2], [0], [0]>} : vector<4x16x8xf32>, vector<4x8x32xf32>, vector<4x16x32xf32> -> vector<4x16x32xf32>
    "tpu.trace_stop"() : () -> ()
    %cst_67 = arith.constant dense<0.000000e+00> : vector<16x32xf32>
    %208 = vector.multi_reduction <add>, %207, %cst_67 [0] : vector<4x16x32xf32> to vector<16x32xf32>
    %209 = vector.broadcast %150 : vector<1x32xf32> to vector<16x32xf32>
    %210 = arith.addf %208, %209 : vector<16x32xf32>
    %211 = arith.addf %138, %210 : vector<16x32xf32>
    %cst_68 = arith.constant dense<0.000000e+00> : vector<16xf32>
    %212 = vector.multi_reduction <add>, %211, %cst_68 [1] : vector<16x32xf32> to vector<16xf32>
    %213 = vector.shape_cast %212 : vector<16xf32> to vector<16x1xf32>
    %cst_69 = arith.constant 3.200000e+01 : f32
    %214 = vector.broadcast %cst_69 : f32 to vector<16x1xf32>
    %215 = arith.divf %213, %214 : vector<16x1xf32>
    %216 = vector.broadcast %215 : vector<16x1xf32> to vector<16x32xf32>
    %217 = arith.subf %211, %216 : vector<16x32xf32>
    %218 = arith.mulf %217, %217 : vector<16x32xf32>
    %cst_70 = arith.constant dense<0.000000e+00> : vector<16xf32>
    %219 = vector.multi_reduction <add>, %218, %cst_70 [1] : vector<16x32xf32> to vector<16xf32>
    %220 = vector.shape_cast %219 : vector<16xf32> to vector<16x1xf32>
    %cst_71 = arith.constant 3.200000e+01 : f32
    %221 = vector.broadcast %cst_71 : f32 to vector<16x1xf32>
    %222 = arith.divf %220, %221 : vector<16x1xf32>
    %223 = vector.broadcast %215 : vector<16x1xf32> to vector<16x32xf32>
    %224 = arith.subf %211, %223 : vector<16x32xf32>
    %cst_72 = arith.constant 9.99999974E-6 : f32
    %225 = vector.broadcast %cst_72 : f32 to vector<16x1xf32>
    %226 = arith.addf %222, %225 : vector<16x1xf32>
    %227 = math.rsqrt %226 : vector<16x1xf32>
    %228 = vector.broadcast %227 : vector<16x1xf32> to vector<16x32xf32>
    %229 = arith.mulf %224, %228 : vector<16x32xf32>
    %230 = vector.broadcast %151 : vector<1x32xf32> to vector<16x32xf32>
    %231 = arith.mulf %229, %230 : vector<16x32xf32>
    %232 = vector.broadcast %152 : vector<1x32xf32> to vector<16x32xf32>
    %233 = arith.addf %231, %232 : vector<16x32xf32>
    %cst_73 = arith.constant dense<0.000000e+00> : vector<16x64xf32>
    %234 = tpu.matmul %233, %144, %cst_73 {dimension_numbers = #tpu.dot_dimension_numbers<[1], [0], [0], [1], [0, 0, 1, 1], [], []>} : vector<16x32xf32>, vector<32x64xf32>, vector<16x64xf32> -> vector<16x64xf32>
    %235 = vector.broadcast %153 : vector<1x64xf32> to vector<16x64xf32>
    %236 = arith.addf %234, %235 : vector<16x64xf32>
    %cst_74 = arith.constant 0.000000e+00 : f32
    %237 = vector.broadcast %cst_74 : f32 to vector<16x64xf32>
    %238 = arith.maximumf %236, %237 : vector<16x64xf32>
    %cst_75 = arith.constant dense<0.000000e+00> : vector<16x32xf32>
    %239 = tpu.matmul %238, %146, %cst_75 {dimension_numbers = #tpu.dot_dimension_numbers<[1], [0], [0], [1], [0, 0, 1, 1], [], []>} : vector<16x64xf32>, vector<64x32xf32>, vector<16x32xf32> -> vector<16x32xf32>
    %240 = vector.broadcast %154 : vector<1x32xf32> to vector<16x32xf32>
    %241 = arith.addf %239, %240 : vector<16x32xf32>
    %242 = arith.addf %233, %241 : vector<16x32xf32>
    %cst_76 = arith.constant dense<0.000000e+00> : vector<16xf32>
    %243 = vector.multi_reduction <add>, %242, %cst_76 [1] : vector<16x32xf32> to vector<16xf32>
    %244 = vector.shape_cast %243 : vector<16xf32> to vector<16x1xf32>
    %cst_77 = arith.constant 3.200000e+01 : f32
    %245 = vector.broadcast %cst_77 : f32 to vector<16x1xf32>
    %246 = arith.divf %244, %245 : vector<16x1xf32>
    %247 = vector.broadcast %246 : vector<16x1xf32> to vector<16x32xf32>
    %248 = arith.subf %242, %247 : vector<16x32xf32>
    %249 = arith.mulf %248, %248 : vector<16x32xf32>
    %cst_78 = arith.constant dense<0.000000e+00> : vector<16xf32>
    %250 = vector.multi_reduction <add>, %249, %cst_78 [1] : vector<16x32xf32> to vector<16xf32>
    %251 = vector.shape_cast %250 : vector<16xf32> to vector<16x1xf32>
    %cst_79 = arith.constant 3.200000e+01 : f32
    %252 = vector.broadcast %cst_79 : f32 to vector<16x1xf32>
    %253 = arith.divf %251, %252 : vector<16x1xf32>
    %254 = vector.broadcast %246 : vector<16x1xf32> to vector<16x32xf32>
    %255 = arith.subf %242, %254 : vector<16x32xf32>
    %cst_80 = arith.constant 9.99999974E-6 : f32
    %256 = vector.broadcast %cst_80 : f32 to vector<16x1xf32>
    %257 = arith.addf %253, %256 : vector<16x1xf32>
    %258 = math.rsqrt %257 : vector<16x1xf32>
    %259 = vector.broadcast %258 : vector<16x1xf32> to vector<16x32xf32>
    %260 = arith.mulf %255, %259 : vector<16x32xf32>
    %261 = vector.broadcast %155 : vector<1x32xf32> to vector<16x32xf32>
    %262 = arith.mulf %260, %261 : vector<16x32xf32>
    %263 = vector.broadcast %156 : vector<1x32xf32> to vector<16x32xf32>
    %264 = arith.addf %262, %263 : vector<16x32xf32>
    %c0_81 = arith.constant 0 : index
    %c0_82 = arith.constant 0 : index
    %265 = vector.load %arg9[%c0_81, %c0_82] : memref<32x128xf32, #tpu.memory_space<vmem>>, vector<32x128xf32>
    %cst_83 = arith.constant dense<0.000000e+00> : vector<16x128xf32>
    %266 = tpu.matmul %264, %265, %cst_83 {dimension_numbers = #tpu.dot_dimension_numbers<[1], [0], [0], [1], [0, 0, 1, 1], [], []>} : vector<16x32xf32>, vector<32x128xf32>, vector<16x128xf32> -> vector<16x128xf32>
    %c0_84 = arith.constant 0 : index
    %c0_85 = arith.constant 0 : index
    %267 = vector.load %arg10[%c0_84, %c0_85] : memref<1x128xf32, #tpu.memory_space<vmem>>, vector<1x128xf32>
    %268 = vector.broadcast %267 : vector<1x128xf32> to vector<16x128xf32>
    %269 = arith.addf %266, %268 : vector<16x128xf32>
    %c0_86 = arith.constant 0 : index
    %c0_87 = arith.constant 0 : index
    %270 = vector.load %arg11[%c0_86, %c0_87] : memref<16x128xf32, #tpu.memory_space<vmem>>, vector<16x128xf32>
    tpu.vector_store %arg11[%c0_86, %c0_87], %269 {strides = array<i32>} : memref<16x128xf32, #tpu.memory_space<vmem>>, vector<16x128xf32>,
    return
  }
}

</mosaic_0001>

<bundles_post_ra>
// kernel: tpu_custom_call.1
= control target key start
LH: loop header
LB: loop body
LE: loop exit
PB: predicated region body
PF: predicated region fallthrough
CT: control target
= control target key end

     0   :  { %16 = vsyncpa [#allocation3], 0  ;;  %s4850_s0 = inlined_call_operand.vmem [shape: s32[16,1], index: 0, kind: input, shape index: {}]   ;;  %s4851_s1 = inlined_call_operand.vmem [shape: f32[16,32], index: 1, kind: input, shape index: {}]   ;;  %s4852_s2 = inlined_call_operand.hbm [shape: f32[16,16], index: 2, kind: input, shape index: {}]   ;;  %s4853_s3 = inlined_call_operand.vmem [shape: f32[50,32], index: 3, kind: input, shape index: {}]   ;;  %s4854_s4 = inlined_call_operand.vmem [shape: f32[2,32,96], index: 4, kind: input, shape index: {}]   ;;  %s4855_s5 = inlined_call_operand.vmem [shape: f32[2,4,8,32], index: 5, kind: input, shape index: {}]   ;;  %s4856_s6 = inlined_call_operand.vmem [shape: f32[2,32,64], index: 6, kind: input, shape index: {}]   ;;  %s4857_s7 = inlined_call_operand.vmem [shape: f32[2,64,32], index: 7, kind: input, shape index: {}]   ;;  %s4858_s8 = inlined_call_operand.vmem [shape: f32[2,8,96], index: 8, kind: input, shape index: {}]   ;;  %s4859_s9 = inlined_call_operand.vmem [shape: f32[32,128], index: 9, kind: input, shape index: {}]   ;;  %s4860_s10 = inlined_call_operand.vmem [shape: f32[1,128], index: 10, kind: input, shape index: {}]   ;;  %s4861_s11 = inlined_call_operand.hbm [shape: f32[16,128], index: 11, kind: output, shape index: {}]  }
   0x1   :  { %17 = vsyncpa [#allocation4], 0  ;;  %s4221_s17 = smov [#allocation2]   ;;  %s4173_s21 = scalar_lea.hbm %s4852_s2, 256 }
   0x2   :  { %s27_s18 = sshll.u32 %s4221_s17, 4  ;;  %p4174_p0 = scmp.ne.s32.totalorder %s4852_s2, %s4173_s21  ;;  %s28_s18 = int_to_ptr.vmem [resolvable:$true] %s27_s18 }
   0x3   :  { %p4177_p1 = scmp.lt.u32.totalorder %s4173_s21, %s4852_s2 }
   0x5   :  { %p4179_p2 = pnand %p4177_p1, %p4174_p0 }
   0x7   :  { %4182 = shalt.err (!%p4179_p2)
}
   0x8   :  { %s4183_s26 = scalar_lea.vmem %s28_s18, 256  ;;  %p4188_p4 = scmp.lt.s32.totalorder %s28_s18, %s28_s18 }
   0x9   :  { %p4184_p3 = scmp.ne.s32.totalorder %s28_s18, %s4183_s26  ;;  %p4189_p5 = scmp.lt.s32.totalorder %s4183_s26, %s4183_s26 }
   0xb   :  { %p4190_p6 = por %p4189_p5, %p4188_p4 }
   0xd   :  { %p4191_p7 = pnand %p4190_p6, %p4184_p3 }
   0xf   :  { %4194 = shalt.err (!%p4191_p7)
}
  0x10   :  { %s4222_s27 = smov 128   ;;  %s4223_s28 = smov 8  }
  0x11   :  { %33 = dma.hbm_to_vmem [thread:$0]  %s4852_s2, 256, %s28_s18, [#allocation3], %s4222_s27, %s4222_s27, %s4223_s28  }
  0x12   :  { %4217 = dma.done.wait [#allocation3], 256  }
  0x13   :  { %4218 = vsyncadd [#allocation3], 4294967040  ;;  %v4224_v0 = vmov 0   ;;  %v53_v1 = vld [vmem:[%s4850_s0] sm:$0xff]  ;;  %v70_v3 = vld [vmem:[%s4853_s3 + $0x8] sm:$0xff]  ;;  %vm83_vm0 = vcmask 1041408   ;;  %v55_v16 = vlaneseq }
  0x14   :  { %4012 = vset.pattern.permute.xlu0 %v4224_v0  ;;  %v69_v2 = vld [vmem:[%s4853_s3] sm:$0xff]  ;;  %v71_v4 = vld [vmem:[%s4853_s3 + $0x10] sm:$0xff]  ;;  %v72_v5 = vld [vmem:[%s4853_s3 + $0x18] sm:$0xff]  ;;  %vm76_vm1 = vcmask 408576   ;;  %v4225_v19 = vmov 0.0   ;;  %vm195_vm4 = vcmask 261120  }
  0x15   :  { %58 = vperm.xlu0 %4012, %v53_v1   ;;  %v54_v6 = vld [vmem:[%s4850_s0 + $0x8] sm:$0xff]  ;;  %v3837_v7 = vpack.c.bf16 %v70_v3, %v69_v2  ;;  %v3841_v8 = vpack.c.bf16 %v72_v5, %v71_v4  ;;  %v73_v9 = vld [vmem:[%s4853_s3 + $0x20] sm:$0xff]  ;;  %v75_v15 = vld [vmem:[%s4853_s3 + $0x30] sm:$0x3]  ;;  %v56_v17 = vand.u32 127, %v55_v16  ;;  %v4360_v34 = vshrl.u32 %v55_v16, 7 }
  0x16   :  { %v74_v10 = vld [vmem:[%s4853_s3 + $0x28] sm:$0xff]  ;;  %v170_v12 = vld [vmem:[%s4854_s4] sm:$0xff]  ;;  %v172_v23 = vld [vmem:[%s4854_s4 + $0x10] sm:$0xff]  ;;  %vm295_vm5 = vcmask 64512   ;;  %s4227_s23 = smov 112   ;;  %s4228_s24 = smov 104  }
  0x17   :  { %3838 = vmatprep.subr.bf16.mxu0 %v3837_v7  ;;  %v3845_v11 = vpack.c.bf16 %v74_v10, %v73_v9  ;;  %v171_v13 = vld [vmem:[%s4854_s4 + $0x8] sm:$0xff]  ;;  %v173_v24 = vld [vmem:[%s4854_s4 + $0x18] sm:$0xff]  ;;  %v164_v29 = vld [vmem:[%s4851_s1] sm:$0xff]  ;;  %v193_v35 = vsub.s32 0, %v4360_v34  ;;  %s4229_s25 = smov 96   ;;  %vm656_vm7 = vcmask 130048  }
  0x18   :  { %3840 = vmatpush3.bf16.msra.mxu0 %v3837_v7  ;;  %v3849_v14 = vpack.c.bf16 %v171_v13, %v170_v12  ;;  %v3853_v25 = vpack.c.bf16 %v173_v24, %v172_v23  ;;  %v165_v30 = vld [vmem:[%s4851_s1 + $0x8] sm:$0xff]  ;;  %v4366_v36 = vld [vmem:[%s4858_s8] sm:$0xff]  ;;  %s4226_s1 = smov 120   ;;  %vm4393_vm6 = vmpackc.low %vm295_vm5, %vm295_vm5  ;;  %s4230_s26 = smov 64   ;;  %vm1569_vm8 = vcmask 523264  }
  0x19   :  { %61 = vperm.xlu0 %4012, %v54_v6   ;;  %3842 = vmatprep.subr.bf16.mxu0 %v3841_v8  ;;  %v194_v37 = vrot.slane %v4366_v36, %v193_v35  ;;  %v4423_v6 = vld [vmem:[#allocation2 + $0x8] sm:$0xff]  ;;  %v4425_v9 = vld [vmem:[#allocation2] sm:$0xff]  ;;  %s4231_s30 = smov [#allocation5]  }
  0x1a   :  { %3850 = vmatprep.subr.bf16.mxu1 %v3849_v14  ;;  %s3311_s0 = sshll.u32 %s4231_s30, 4  ;;  %s3312_s0 = int_to_ptr.vmem [resolvable:$true] %s3311_s0 }
  0x1b   :  { %3852 = vmatpush3.bf16.msra.mxu1 %v3849_v14  ;;  %s4195_s12 = scalar_lea.vmem %s3312_s0, 256  ;;  %p4200_p9 = scmp.lt.s32.totalorder %s3312_s0, %s3312_s0 }
  0x1c   :  { %3844 = vmatpush3.bf16.msra.mxu0 %v3841_v8  ;;  %3854 = vmatprep.subr.bf16.mxu1 %v3853_v25  ;;  %p4196_p8 = scmp.ne.s32.totalorder %s3312_s0, %s4195_s12  ;;  %p4201_p10 = scmp.lt.s32.totalorder %s4195_s12, %s4195_s12 }
  0x1d   :  { %3846 = vmatprep.subr.bf16.mxu0 %v3845_v11 }
  0x1e   :  { %p4202_p11 = por %p4201_p10, %p4200_p9 }
  0x1f   :  { %3856 = vmatpush3.bf16.msra.mxu1 %v3853_v25 }
  0x20   :  { %3848 = vmatpush3.bf16.msra.mxu0 %v3845_v11  ;;  %p4203_p12 = pnand %p4202_p11, %p4196_p8 }
  0x21   :  { %3587 = vmatprep.subr.msk.mxu0 %vm83_vm0, %v75_v15 }
  0x24   :  { %3588 = vmatpush3.msk.msra.mxu0 %vm83_vm0, %v75_v15 }
  0x94   :  { %v59_v18 = vpop.permute.xlu0 %58 }
  0x95   :  { %vm63_vm2 = vcmp.eq.s32.totalorder %v56_v17, %v59_v18 }
  0x96   :  { %v3323_v20 = vsel %vm63_vm2, 1.0, %v4225_v19 }
  0x97   :  { %3589 = vmatprep.mubr.msk.f32.mxu0 %vm76_vm1, %v3323_v20 }
  0x98   :  { %v62_v21 = vpop.permute.xlu0 %61 }
  0x99   :  { %vm64_vm3 = vcmp.eq.s32.totalorder %v56_v17, %v62_v21 }
  0x9a   :  { %v3324_v22 = vsel %vm64_vm3, 1.0, %v4225_v19 }
  0x9b   :  { %3590 = vmatmul.mubr.msk.f32.vlgmr.msra.gmra.mrb[0].mxu0 %vm76_vm1, %v3324_v22 }
 0x16e   :  { %v3591_v26 = vpop.f32.mrb[0].mxu0 }
 0x16f   :  { %v163_v27 = vmul.f32 5.656854, %v3591_v26  ;;  %v153_v28 = vpop.f32.mrb[1].mxu0 }
 0x170   :  { %v162_v31 = vmul.f32 5.656854, %v153_v28 }
 0x171   :  { %v4354_v33 = vadd.f32 %v165_v30, %v163_v27 }
 0x172   :  { %v4352_v32 = vadd.f32 %v164_v29, %v162_v31 }
 0x174   :  { %3600 = vmatprep.mubr.msk.f32.mxu1 %vm195_vm4, %v4352_v32 }
 0x175   :  { %3601 = vmatmul.mubr.msk.f32.vlgmr.msra.gmra.mrb[0].mxu1 %vm195_vm4, %v4354_v33 }
 0x248   :  { %v3602_v38 = vpop.f32.mrb[0].mxu1 }
 0x249   :  { %v274_v39 = vadd.f32 %v3602_v38, %v194_v37  ;;  %v268_v40 = vpop.f32.mrb[1].mxu1 }
 0x24a   :  { %v269_v41 = vadd.f32 %v268_v40, %v194_v37 }
 0x24b   :  { %281 = vrot.lane.b32.xlu1 %v274_v39, %s4226_s1 }
 0x24c   :  { %283 = vrot.lane.b32.xlu0 %v269_v41, %s4227_s23  ;;  %3607 = vmatprep.mubr.msk.f32.mxu1 %vm295_vm5, %v269_v41  ;;  %v4376_v42 = vpack.i.bf16 %v274_v39, %v269_v41 }
 0x24f   :  { %279 = vrot.lane.b32.xlu1 %v269_v41, %s4226_s1 }
 0x250   :  { %287 = vrot.lane.b32.xlu0 %v269_v41, %s4228_s24 }
 0x253   :  { %285 = vrot.lane.b32.xlu1 %v274_v39, %s4227_s23 }
 0x254   :  { %4014 = vrot.lane.b32.xlu0 %v4376_v42, %s4229_s25 }
 0x257   :  { %289 = vrot.lane.b32.xlu1 %v274_v39, %s4228_s24 }
 0x2bd   :  { %v282_v43 = vpop.permute.xlu1 %281 }
 0x2be   :  { %v284_v44 = vpop.permute.xlu0 %283 }
 0x2c1   :  { %v280_v45 = vpop.permute.xlu1 %279 }
 0x2c2   :  { %v4382_v46 = vpack.i.bf16 %v282_v43, %v280_v45  ;;  %v288_v47 = vpop.permute.xlu0 %287  ;;  %3614 = vmatprep.mubr.msk.f32.mxu0 %vm295_vm5, %v280_v45 }
 0x2c4   :  { %4019 = vrot.lane.b32.xlu1 %v4382_v46, %s4229_s25 }
 0x2c5   :  { %v286_v48 = vpop.permute.xlu1 %285 }
 0x2c6   :  { %v4387_v49 = vpack.i.bf16 %v286_v48, %v284_v44  ;;  %v4015_v50 = vpop.permute.xlu0 %4014 }
 0x2c7   :  { %v4017_v51 = vunpack.i.h.bf16 %v4015_v50  ;;  %v4016_v52 = vunpack.i.l.bf16 %v4015_v50 }
 0x2c8   :  { %4024 = vrot.lane.b32.xlu0 %v4387_v49, %s4229_s25 }
 0x2c9   :  { %v3857_v54 = vpack.c.bf16 %v4017_v51, %v4016_v52  ;;  %v290_v55 = vpop.permute.xlu1 %289 }
 0x2ca   :  { %v4397_v56 = vpack.i.bf16 %v290_v55, %v288_v47 }
 0x2cb   :  { %3859 = vmatprep.subr.msk.bf16.mxu1 %vm4393_vm6, %v3857_v54 }
 0x2cc   :  { %3862 = vmatpush3.bf16.xpose.msk.msra.mxu1 %vm4393_vm6, %v3857_v54  ;;  %4029 = vrot.lane.b32.xlu1 %v4397_v56, %s4229_s25 }
 0x2d3   :  { %3608 = vmatmul.mubr.msk.f32.vlgmr.msra.gmra.mrb[2].mxu1 %vm295_vm5, %v274_v39 }
 0x2d4   :  { %3621 = vmatprep.mubr.msk.f32.mxu1 %vm295_vm5, %v284_v44 }
 0x336   :  { %v4020_v57 = vpop.permute.xlu1 %4019 }
 0x337   :  { %v4022_v58 = vunpack.i.h.bf16 %v4020_v57  ;;  %v4021_v59 = vunpack.i.l.bf16 %v4020_v57 }
 0x339   :  { %v3863_v60 = vpack.c.bf16 %v4022_v58, %v4021_v59 }
 0x33a   :  { %v4025_v61 = vpop.permute.xlu0 %4024 }
 0x33b   :  { %v4027_v62 = vunpack.i.h.bf16 %v4025_v61  ;;  %v4026_v63 = vunpack.i.l.bf16 %v4025_v61  ;;  %3865 = vmatprep.subr.msk.bf16.mxu0 %vm4393_vm6, %v3863_v60 }
 0x33c   :  { %3868 = vmatpush3.bf16.xpose.msk.msra.mxu0 %vm4393_vm6, %v3863_v60 }
 0x33d   :  { %v3869_v0 = vpack.c.bf16 %v4027_v62, %v4026_v63 }
 0x33e   :  { %v4030_v1 = vpop.permute.xlu1 %4029 }
 0x33f   :  { %v4032_v2 = vunpack.i.h.bf16 %v4030_v1  ;;  %v4031_v3 = vunpack.i.l.bf16 %v4030_v1  ;;  %3871 = vmatprep.subr.msk.bf16.mxu1 %vm4393_vm6, %v3869_v0 }
 0x340   :  { %3874 = vmatpush3.bf16.xpose.msk.msra.mxu1 %vm4393_vm6, %v3869_v0 }
 0x341   :  { %v3875_v4 = vpack.c.bf16 %v4032_v2, %v4031_v3 }
 0x343   :  { %3615 = vmatmul.mubr.msk.f32.vlgmr.msra.gmra.mrb[2].mxu0 %vm295_vm5, %v282_v43  ;;  %3877 = vmatprep.subr.msk.bf16.mxu0 %vm4393_vm6, %v3875_v4 }
 0x344   :  { %3880 = vmatpush3.bf16.xpose.msk.msra.mxu0 %vm4393_vm6, %v3875_v4  ;;  %3628 = vmatprep.mubr.msk.f32.mxu0 %vm295_vm5, %v288_v47 }
 0x347   :  { %3622 = vmatmul.mubr.msk.f32.vlgmr.msra.gmra.mrb[4].mxu1 %vm295_vm5, %v286_v48 }
 0x34b   :  { %3629 = vmatmul.mubr.msk.f32.vlgmr.msra.gmra.mrb[4].mxu0 %vm295_vm5, %v290_v55 }
 0x3a6   :  { %v3609_v5 = vpop.f32.mrb[2].mxu1 }
 0x3a7   :  { %v641_v7 = vmul.f32 0.35355338, %v3609_v5  ;;  %v370_v8 = vpop.f32.mrb[3].mxu1 }
 0x3a8   :  { %v640_v10 = vmul.f32 0.35355338, %v370_v8 }
 0x3a9   :  { %v649_v11 = vadd.f32 %v641_v7, %v4423_v6 }
 0x3aa   :  { %v648_v12 = vadd.f32 %v640_v10, %v4425_v9 }
 0x3ab   :  { %v660_v13 = vsel %vm656_vm7, %v649_v11, -inf }
 0x3ac   :  { %661 = vmax.xlane.f32.xlu1 %v660_v13  ;;  %v657_v14 = vsel %vm656_vm7, %v648_v12, -inf }
 0x3ad   :  { %658 = vmax.xlane.f32.xlu0 %v657_v14 }
 0x416   :  { %v3616_v15 = vpop.f32.mrb[2].mxu0 }
 0x417   :  { %v643_v16 = vmul.f32 0.35355338, %v3616_v15  ;;  %v457_v17 = vpop.f32.mrb[3].mxu0 }
 0x418   :  { %v642_v18 = vmul.f32 0.35355338, %v457_v17 }
 0x419   :  { %v651_v19 = vadd.f32 %v643_v16, %v4423_v6 }
 0x41a   :  { %v3623_v20 = vpop.f32.mrb[4].mxu1  ;;  %v650_v24 = vadd.f32 %v642_v18, %v4425_v9 }
 0x41b   :  { %v645_v21 = vmul.f32 0.35355338, %v3623_v20  ;;  %v544_v22 = vpop.f32.mrb[5].mxu1  ;;  %v666_v23 = vsel %vm656_vm7, %v651_v19, -inf }
 0x41c   :  { %v644_v25 = vmul.f32 0.35355338, %v544_v22  ;;  %667 = vmax.xlane.f32.xlu0 %v666_v23  ;;  %v663_v30 = vsel %vm656_vm7, %v650_v24, -inf }
 0x41d   :  { %v653_v31 = vadd.f32 %v645_v21, %v4423_v6 }
 0x41e   :  { %v3630_v26 = vpop.f32.mrb[4].mxu0  ;;  %v652_v27 = vadd.f32 %v644_v25, %v4425_v9 }
 0x41f   :  { %v647_v28 = vmul.f32 0.35355338, %v3630_v26  ;;  %v631_v29 = vpop.f32.mrb[5].mxu0  ;;  %v672_v40 = vsel %vm656_vm7, %v653_v31, -inf }
 0x420   :  { %v646_v37 = vmul.f32 0.35355338, %v631_v29  ;;  %664 = vmax.xlane.f32.xlu0 %v663_v30  ;;  %v669_v38 = vsel %vm656_vm7, %v652_v27, -inf }
 0x421   :  { %670 = vmax.xlane.f32.xlu1 %v669_v38  ;;  %v655_v41 = vadd.f32 %v647_v28, %v4423_v6 }
 0x422   :  { %v4439_v39 = vadd.f32 %v646_v37, %v4425_v9 }
 0x423   :  { %v678_v44 = vsel %vm656_vm7, %v655_v41, -inf }
 0x424   :  { %673 = vmax.xlane.f32.xlu0 %v672_v40  ;;  %v675_v43 = vsel %vm656_vm7, %v4439_v39, -inf }
 0x425   :  { %676 = vmax.xlane.f32.xlu1 %v675_v43 }
 0x428   :  { %679 = vmax.xlane.f32.xlu0 %v678_v44 }
 0x436   :  { %4034 = vrot.lane.b32.xlu1 %v4376_v42, %s4230_s26 }
 0x439   :  { %v662_v45 = vpop.xlane.xlu1 %661 }
 0x43a   :  { %v682_v47 = vsub.f32 %v649_v11, %v662_v45  ;;  %v659_v50 = vpop.xlane.xlu0 %658 }
 0x43b   :  { %v681_v51 = vsub.f32 %v648_v12, %v659_v50 }
 0x43c   :  { %v691_v48 = vmul.f32 1.442695, %v682_v47 }
 0x43d   :  { %v689_v54 = vmul.f32 1.442695, %v681_v51 }
 0x43e   :  { %4093 = vpow2.f32 %v691_v48 }
 0x43f   :  { %4095 = vpow2.f32 %v689_v54 }
 0x448   :  { %v4448_v52 = vpop.eup %4093 }
 0x449   :  { %v708_v55 = vsel %vm656_vm7, %v4448_v52, 0.0  ;;  %v4096_v57 = vpop.eup %4095 }
 0x44a   :  { %709 = vadd.xlane.f32.xlu0 %v708_v55  ;;  %v705_v58 = vsel %vm656_vm7, %v4096_v57, 0.0 }
 0x45a   :  { %706 = vadd.xlane.f32.xlu1 %v705_v58 }
 0x4a9   :  { %v668_v59 = vpop.xlane.xlu0 %667 }
 0x4aa   :  { %v684_v42 = vsub.f32 %v651_v19, %v668_v59 }
 0x4ac   :  { %v695_v60 = vmul.f32 1.442695, %v684_v42 }
 0x4ad   :  { %v665_v61 = vpop.xlane.xlu0 %664 }
 0x4ae   :  { %4097 = vpow2.f32 %v695_v60  ;;  %v683_v62 = vsub.f32 %v650_v24, %v665_v61  ;;  %v671_v63 = vpop.xlane.xlu1 %670 }
 0x4af   :  { %v685_v0 = vsub.f32 %v652_v27, %v671_v63 }
 0x4b0   :  { %v693_v1 = vmul.f32 1.442695, %v683_v62 }
 0x4b1   :  { %v697_v2 = vmul.f32 1.442695, %v685_v0  ;;  %v674_v3 = vpop.xlane.xlu0 %673 }
 0x4b2   :  { %4099 = vpow2.f32 %v693_v1  ;;  %v686_v4 = vsub.f32 %v653_v31, %v674_v3  ;;  %v677_v5 = vpop.xlane.xlu1 %676 }
 0x4b3   :  { %4101 = vpow2.f32 %v697_v2  ;;  %v687_v26 = vsub.f32 %v4439_v39, %v677_v5 }
 0x4b4   :  { %v699_v7 = vmul.f32 1.442695, %v686_v4 }
 0x4b5   :  { %v680_v8 = vpop.xlane.xlu0 %679  ;;  %v701_v28 = vmul.f32 1.442695, %v687_v26 }
 0x4b6   :  { %4103 = vpow2.f32 %v699_v7  ;;  %v688_v10 = vsub.f32 %v655_v41, %v680_v8  ;;  %v4035_v11 = vpop.permute.xlu1 %4034 }
 0x4b7   :  { %v4037_v12 = vunpack.i.h.bf16 %v4035_v11  ;;  %v4036_v13 = vunpack.i.l.bf16 %v4035_v11  ;;  %v176_v11 = vld [vmem:[%s4855_s5 + $0x10] sm:$0xff] }
 0x4b8   :  { %v4453_v14 = vpop.eup %4097  ;;  %v703_v15 = vmul.f32 1.442695, %v688_v10 }
 0x4b9   :  { %v3881_v16 = vpack.c.bf16 %v4037_v12, %v4036_v13  ;;  %v714_v17 = vsel %vm656_vm7, %v4453_v14, 0.0  ;;  %v175_v12 = vld [vmem:[%s4855_s5 + $0x8] sm:$0xff]  ;;  %v177_v13 = vld [vmem:[%s4855_s5 + $0x18] sm:$0xff] }
 0x4ba   :  { %4105 = vpow2.f32 %v703_v15  ;;  %715 = vadd.xlane.f32.xlu0 %v714_v17 }
 0x4bb   :  { %3882 = vmatprep.subr.bf16.mxu1 %v3881_v16 }
 0x4bc   :  { %v4100_v18 = vpop.eup %4099  ;;  %3884 = vmatpush3.bf16.msra.mxu1 %v3881_v16 }
 0x4bd   :  { %v711_v19 = vsel %vm656_vm7, %v4100_v18, 0.0  ;;  %v4102_v20 = vpop.eup %4101 }
 0x4be   :  { %712 = vadd.xlane.f32.xlu1 %v711_v19  ;;  %v717_v23 = vsel %vm656_vm7, %v4102_v20, 0.0 }
 0x4c0   :  { %v4104_v21 = vpop.eup %4103 }
 0x4c1   :  { %v720_v22 = vsel %vm656_vm7, %v4104_v21, 0.0 }
 0x4c2   :  { %721 = vadd.xlane.f32.xlu0 %v720_v22  ;;  %718 = vadd.xlane.f32.xlu1 %v717_v23 }
 0x4c4   :  { %v4460_v24 = vpop.eup %4105 }
 0x4c5   :  { %v726_v25 = vsel %vm656_vm7, %v4460_v24, 0.0 }
 0x4c6   :  { %727 = vadd.xlane.f32.xlu0 %v726_v25 }
 0x4d3   :  { %4044 = vrot.lane.b32.xlu1 %v4387_v49, %s4230_s26 }
 0x4d7   :  { %v710_v27 = vpop.xlane.xlu0 %709 }
 0x4d8   :  { %4107 = vrcp.f32 %v710_v27 }
 0x4dc   :  { %4039 = vrot.lane.b32.xlu0 %v4382_v46, %s4230_s26 }
 0x4e2   :  { %v4108_v30 = vpop.eup %4107 }
 0x4e3   :  { %v738_v40 = vmul.f32 %v4108_v30, %v4448_v52 }
 0x4e7   :  { %v707_v29 = vpop.xlane.xlu1 %706 }
 0x4e8   :  { %4109 = vrcp.f32 %v707_v29 }
 0x4e9   :  { %4111 = vpow2.f32 %v701_v28 }
 0x4f2   :  { %v4110_v31 = vpop.eup %4109 }
 0x4f3   :  { %v4112_v37 = vpop.eup %4111  ;;  %v737_v38 = vmul.f32 %v4110_v31, %v4096_v57 }
 0x4f4   :  { %v723_v46 = vsel %vm656_vm7, %v4112_v37, 0.0 }
 0x4f5   :  { %3635 = vmatprep.mubr.msk.f32.mxu1 %vm656_vm7, %v737_v38 }
 0x4f6   :  { %3636 = vmatmul.mubr.msk.f32.vlgmr.msra.gmra.mrb[6].mxu1 %vm656_vm7, %v738_v40 }
 0x4f7   :  { %724 = vadd.xlane.f32.xlu1 %v723_v46 }
 0x508   :  { %4049 = vrot.lane.b32.xlu1 %v4397_v56, %s4230_s26  ;;  %v174_v56 = vld [vmem:[%s4855_s5] sm:$0xff] }
 0x547   :  { %v716_v49 = vpop.xlane.xlu0 %715 }
 0x54b   :  { %v713_v39 = vpop.xlane.xlu1 %712 }
 0x54c   :  { %4113 = vrcp.f32 %v713_v39 }
 0x54d   :  { %4115 = vrcp.f32 %v716_v49 }
 0x54f   :  { %v722_v41 = vpop.xlane.xlu0 %721  ;;  %v719_v43 = vpop.xlane.xlu1 %718 }
 0x550   :  { %4117 = vrcp.f32 %v722_v41  ;;  %v1433_v41 = vsub.s32 1, %v4360_v34 }
 0x551   :  { %4119 = vrcp.f32 %v719_v43 }
 0x553   :  { %v728_v44 = vpop.xlane.xlu0 %727  ;;  %v4045_v45 = vpop.permute.xlu1 %4044 }
 0x554   :  { %v4047_v47 = vunpack.i.h.bf16 %v4045_v45  ;;  %v4046_v48 = vunpack.i.l.bf16 %v4045_v45  ;;  %4121 = vrcp.f32 %v728_v44  ;;  %v1434_v44 = vrot.slane %v4366_v36, %v1433_v41 }
 0x556   :  { %v4114_v50 = vpop.eup %4113  ;;  %v3889_v51 = vpack.c.bf16 %v4047_v47, %v4046_v48 }
 0x557   :  { %v4040_v52 = vpop.permute.xlu0 %4039  ;;  %v739_v54 = vmul.f32 %v4114_v50, %v4100_v18  ;;  %v4116_v58 = vpop.eup %4115 }
 0x558   :  { %v4042_v55 = vunpack.i.h.bf16 %v4040_v52  ;;  %v4041_v57 = vunpack.i.l.bf16 %v4040_v52  ;;  %3890 = vmatprep.subr.bf16.mxu0 %v3889_v51  ;;  %v740_v63 = vmul.f32 %v4116_v58, %v4453_v14 }
 0x559   :  { %3642 = vmatprep.mubr.msk.f32.mxu1 %vm656_vm7, %v739_v54  ;;  %3892 = vmatpush3.bf16.msra.mxu0 %v3889_v51 }
 0x55a   :  { %v4118_v59 = vpop.eup %4117  ;;  %v3885_v42 = vpack.c.bf16 %v4042_v55, %v4041_v57  ;;  %3659 = vmatprep.subr.mxu0 %v174_v56 }
 0x55b   :  { %v4120_v60 = vpop.eup %4119  ;;  %v742_v61 = vmul.f32 %v4118_v59, %v4104_v21 }
 0x55c   :  { %3886 = vmatprep.subr.bf16.mxu1 %v3885_v42  ;;  %v741_v62 = vmul.f32 %v4120_v60, %v4102_v20 }
 0x55d   :  { %3888 = vmatpush3.bf16.msra.mxu1 %v3885_v42 }
 0x55e   :  { %3649 = vmatprep.mubr.msk.f32.mxu0 %vm656_vm7, %v741_v62  ;;  %v4122_v5 = vpop.eup %4121 }
 0x55f   :  { %3650 = vmatmul.mubr.msk.f32.vlgmr.msra.gmra.mrb[6].mxu0 %vm656_vm7, %v742_v61  ;;  %v744_v10 = vmul.f32 %v4122_v5, %v4460_v24  ;;  %v180_v5 = vld [vmem:[%s4856_s6 + $0x10] sm:$0xff] }
 0x560   :  { %3643 = vmatmul.mubr.msk.f32.vlgmr.msra.gmra.mrb[8].mxu1 %vm656_vm7, %v740_v63  ;;  %3660 = vmatpush3.msra.mxu0 %v174_v56 }
 0x561   :  { %3669 = vmatprep.subr.mxu0 %v176_v11 }
 0x584   :  { %v725_v0 = vpop.xlane.xlu1 %724 }
 0x585   :  { %4123 = vrcp.f32 %v725_v0 }
 0x588   :  { %v4050_v1 = vpop.permute.xlu1 %4049 }
 0x589   :  { %v4052_v2 = vunpack.i.h.bf16 %v4050_v1  ;;  %v4051_v3 = vunpack.i.l.bf16 %v4050_v1 }
 0x58b   :  { %v3893_v4 = vpack.c.bf16 %v4052_v2, %v4051_v3  ;;  %v179_v3 = vld [vmem:[%s4856_s6 + $0x8] sm:$0xff] }
 0x58d   :  { %3894 = vmatprep.subr.bf16.mxu1 %v3893_v4 }
 0x58e   :  { %3896 = vmatpush3.bf16.msra.mxu1 %v3893_v4 }
 0x58f   :  { %v4124_v7 = vpop.eup %4123  ;;  %3664 = vmatprep.subr.mxu1 %v175_v12 }
 0x590   :  { %v743_v8 = vmul.f32 %v4124_v7, %v4112_v37  ;;  %v181_v7 = vld [vmem:[%s4856_s6 + $0x18] sm:$0xff] }
 0x592   :  { %3656 = vmatprep.mubr.msk.f32.mxu1 %vm656_vm7, %v743_v8  ;;  %v3901_v8 = vpack.c.bf16 %v181_v7, %v180_v5 }
 0x593   :  { %3657 = vmatmul.mubr.msk.f32.vlgmr.msra.gmra.mrb[10].mxu1 %vm656_vm7, %v744_v10  ;;  %v182_v10 = vld [vmem:[%s4857_s7] sm:$0xff] }
 0x594   :  { %3665 = vmatpush3.msra.mxu1 %v175_v12  ;;  %v184_v12 = vld [vmem:[%s4857_s7 + $0x10] sm:$0xff] }
 0x595   :  { %3674 = vmatprep.subr.mxu1 %v177_v13 }
 0x5c9   :  { %v3637_v14 = vpop.f32.mrb[6].mxu1 }
 0x5ca   :  { %v823_v15 = vpop.f32.mrb[7].mxu1 }
 0x5cb   :  { %3661 = vmatprep.mubr.msk.f32.mxu0 %vm295_vm5, %v823_v15 }
 0x5cc   :  { %3662 = vmatmul.mubr.msk.f32.vlgmr.msra.gmra.mrb[8].mxu0 %vm295_vm5, %v3637_v14  ;;  %v185_v14 = vld [vmem:[%s4857_s7 + $0x18] sm:$0xff] }
 0x5cd   :  { %3670 = vmatpush3.msra.mxu0 %v176_v11  ;;  %v183_v11 = vld [vmem:[%s4857_s7 + $0x8] sm:$0xff]  ;;  %v3909_v15 = vpack.c.bf16 %v185_v14, %v184_v12  ;;  %v3368_v14 = vld [vmem:[%s4854_s4 + $0x30] sm:$0xff] }
 0x5ce   :  { %v3367_v12 = vld [vmem:[%s4854_s4 + $0x28] sm:$0xff] }
 0x632   :  { %v3651_v16 = vpop.f32.mrb[6].mxu0 }
 0x633   :  { %v997_v17 = vpop.f32.mrb[7].mxu0  ;;  %v3644_v18 = vpop.f32.mrb[8].mxu1 }
 0x634   :  { %3671 = vmatprep.mubr.msk.f32.mxu0 %vm295_vm5, %v997_v17  ;;  %v910_v19 = vpop.f32.mrb[9].mxu1  ;;  %v187_v17 = vld [vmem:[%s4857_s7 + $0x28] sm:$0xff] }
 0x635   :  { %3672 = vmatmul.mubr.msk.f32.vlgmr.msra.gmra.mrb[10].mxu0 %vm295_vm5, %v3651_v16  ;;  %3666 = vmatprep.mubr.msk.f32.mxu1 %vm295_vm5, %v910_v19  ;;  %v186_v16 = vld [vmem:[%s4857_s7 + $0x20] sm:$0xff] }
 0x636   :  { %3667 = vmatmul.mubr.msk.f32.vlgmr.msra.gmra.mrb[12].mxu1 %vm295_vm5, %v3644_v18  ;;  %v3913_v18 = vpack.c.bf16 %v187_v17, %v186_v16 }
 0x637   :  { %3675 = vmatpush3.msra.mxu1 %v177_v13  ;;  %v3905_v13 = vpack.c.bf16 %v183_v11, %v182_v10  ;;  %v3366_v11 = vld [vmem:[%s4854_s4 + $0x20] sm:$0xff] }
 0x639   :  { %3906 = vmatprep.subr.bf16.mxu1 %v3905_v13 }
 0x666   :  { %v3658_v20 = vpop.f32.mrb[10].mxu1 }
 0x667   :  { %v1084_v21 = vpop.f32.mrb[11].mxu1 }
 0x668   :  { %3676 = vmatprep.mubr.msk.f32.mxu1 %vm295_vm5, %v1084_v21 }
 0x669   :  { %3677 = vmatmul.mubr.msk.f32.vlgmr.msra.gmra.mrb[14].mxu1 %vm295_vm5, %v3658_v20 }
 0x66a   :  { %3908 = vmatpush3.bf16.msra.mxu1 %v3905_v13  ;;  %v3921_v13 = vpack.c.bf16 %v3367_v12, %v3366_v11 }
 0x66b   :  { %3910 = vmatprep.subr.bf16.mxu1 %v3909_v15 }
 0x66e   :  { %3912 = vmatpush3.bf16.msra.mxu1 %v3909_v15  ;;  %v3369_v15 = vld [vmem:[%s4854_s4 + $0x38] sm:$0xff] }
 0x66f   :  { %3914 = vmatprep.subr.bf16.mxu1 %v3913_v18  ;;  %v3925_v16 = vpack.c.bf16 %v3369_v15, %v3368_v14 }
 0x672   :  { %3916 = vmatpush3.bf16.msra.mxu1 %v3913_v18 }
 0x69f   :  { %v3663_v22 = vpop.f32.mrb[8].mxu0 }
 0x6a0   :  { %v1165_v23 = vpop.f32.mrb[9].mxu0  ;;  %v1424_v27 = vsel %vm195_vm4, %v3663_v22, 0.0 }
 0x6a1   :  { %v1417_v30 = vsel %vm195_vm4, %v1165_v23, 0.0 }
 0x708   :  { %v3673_v24 = vpop.f32.mrb[10].mxu0 }
 0x709   :  { %v1327_v25 = vpop.f32.mrb[11].mxu0  ;;  %v3668_v26 = vpop.f32.mrb[12].mxu1  ;;  %v1427_v38 = vsel %vm195_vm4, %v3673_v24, 0.0 }
 0x70a   :  { %v1425_v28 = vsel %vm195_vm4, %v3668_v26, 0.0  ;;  %v1246_v29 = vpop.f32.mrb[13].mxu1  ;;  %v1420_v46 = vsel %vm195_vm4, %v1327_v25, 0.0  ;;  %v1468_v25 = vsub.s32 2, %v4360_v34  ;;  %v1474_v26 = vsub.s32 3, %v4360_v34 }
 0x70b   :  { %v1426_v31 = vadd.f32 %v1425_v28, %v1424_v27  ;;  %v1418_v37 = vsel %vm195_vm4, %v1246_v29, 0.0 }
 0x70c   :  { %v1419_v40 = vadd.f32 %v1418_v37, %v1417_v30  ;;  %v1469_v27 = vrot.slane %v4366_v36, %v1468_v25  ;;  %v1475_v30 = vrot.slane %v4366_v36, %v1474_v26 }
 0x70d   :  { %v1428_v49 = vadd.f32 %v1427_v38, %v1426_v31 }
 0x70e   :  { %v1421_v39 = vadd.f32 %v1420_v46, %v1419_v40 }
 0x73c   :  { %v3678_v43 = vpop.f32.mrb[14].mxu1 }
 0x73d   :  { %v1429_v45 = vsel %vm195_vm4, %v3678_v43, 0.0  ;;  %v1408_v47 = vpop.f32.mrb[15].mxu1  ;;  %v189_v43 = vld [vmem:[%s4857_s7 + $0x38] sm:$0xff] }
 0x73e   :  { %v1430_v48 = vadd.f32 %v1429_v45, %v1428_v49  ;;  %v1422_v50 = vsel %vm195_vm4, %v1408_v47, 0.0  ;;  %v1480_v45 = vsub.s32 4, %v4360_v34 }
 0x73f   :  { %v1423_v51 = vadd.f32 %v1422_v50, %v1421_v39  ;;  %v188_v39 = vld [vmem:[%s4857_s7 + $0x30] sm:$0xff] }
 0x740   :  { %v1436_v52 = vadd.f32 %v1434_v44, %v1430_v48  ;;  %v1481_v47 = vrot.slane %v4366_v36, %v1480_v45 }
 0x741   :  { %v1435_v54 = vadd.f32 %v1434_v44, %v1423_v51  ;;  %v3917_v44 = vpack.c.bf16 %v189_v43, %v188_v39  ;;  %v4612_v39 = vld [vmem:[%s4858_s8 + $0x8] sm:$0xff] }
 0x742   :  { %v1438_v56 = vadd.f32 %v1436_v52, %v4354_v33 }
 0x743   :  { %v1437_v55 = vadd.f32 %v1435_v54, %v4352_v32  ;;  %v178_v32 = vld [vmem:[%s4856_s6] sm:$0xff]  ;;  %3918 = vmatprep.subr.bf16.mxu1 %v3917_v44 }
 0x744   :  { %v1442_v57 = vsel %vm195_vm4, %v1438_v56, 0.0  ;;  %v3897_v4 = vpack.c.bf16 %v179_v3, %v178_v32  ;;  %3920 = vmatpush3.bf16.msra.mxu1 %v3917_v44 }
 0x745   :  { %1443 = vadd.xlane.f32.xlu1 %v1442_v57  ;;  %v1439_v58 = vsel %vm195_vm4, %v1437_v55, 0.0 }
 0x746   :  { %1440 = vadd.xlane.f32.xlu0 %v1439_v58  ;;  %3898 = vmatprep.subr.bf16.mxu0 %v3897_v4 }
 0x747   :  { %3900 = vmatpush3.bf16.msra.mxu0 %v3897_v4 }
 0x748   :  { %3902 = vmatprep.subr.bf16.mxu0 %v3901_v8 }
 0x74b   :  { %3904 = vmatpush3.bf16.msra.mxu0 %v3901_v8 }
 0x74c   :  { %3922 = vmatprep.subr.bf16.mxu0 %v3921_v13 }
 0x7d2   :  { %v1444_v59 = vpop.xlane.xlu1 %1443 }
 0x7d3   :  { %v1447_v42 = vmul.f32 0.03125, %v1444_v59  ;;  %v1441_v60 = vpop.xlane.xlu0 %1440 }
 0x7d4   :  { %v1446_v61 = vmul.f32 0.03125, %v1441_v60 }
 0x7d5   :  { %v1449_v62 = vsub.f32 %v1438_v56, %v1447_v42 }
 0x7d6   :  { %v1448_v63 = vsub.f32 %v1437_v55, %v1446_v61  ;;  %v1567_v55 = vsub.s32 5, %v4360_v34 }
 0x7d7   :  { %v1451_v2 = vmul.f32 %v1449_v62, %v1449_v62 }
 0x7d8   :  { %v1450_v0 = vmul.f32 %v1448_v63, %v1448_v63  ;;  %v1568_v57 = vrot.slane %v4366_v36, %v1567_v55 }
 0x7d9   :  { %v1455_v33 = vsel %vm195_vm4, %v1451_v2, 0.0 }
 0x7da   :  { %v1452_v1 = vsel %vm195_vm4, %v1450_v0, 0.0 }
 0x7db   :  { %1453 = vadd.xlane.f32.xlu0 %v1452_v1 }
 0x7df   :  { %1456 = vadd.xlane.f32.xlu0 %v1455_v33 }
 0x868   :  { %v1454_v19 = vpop.xlane.xlu0 %1453 }
 0x869   :  { %v1458_v20 = vmul.f32 0.03125, %v1454_v19 }
 0x86b   :  { %v1460_v21 = vadd.f32 1e-05, %v1458_v20 }
 0x86c   :  { %v1457_v22 = vpop.xlane.xlu0 %1456 }
 0x86d   :  { %4125 = vrsqrt.f32 %v1460_v21  ;;  %v1459_v23 = vmul.f32 0.03125, %v1457_v22 }
 0x86f   :  { %v1461_v24 = vadd.f32 1e-05, %v1459_v23  ;;  %v1681_v23 = vsub.s32 6, %v4360_v34 }
 0x871   :  { %4127 = vrsqrt.f32 %v1461_v24  ;;  %v1687_v24 = vsub.s32 7, %v4360_v34 }
 0x877   :  { %v4126_v28 = vpop.eup %4125 }
 0x878   :  { %v1464_v29 = vmul.f32 %v4126_v28, %v1448_v63 }
 0x87a   :  { %v1470_v31 = vmul.f32 %v1469_v27, %v1464_v29 }
 0x87b   :  { %v4128_v37 = vpop.eup %4127 }
 0x87c   :  { %v1465_v38 = vmul.f32 %v4128_v37, %v1449_v62  ;;  %v1476_v40 = vadd.f32 %v1475_v30, %v1470_v31  ;;  %v1688_v37 = vrot.slane %v4366_v36, %v1687_v24 }
 0x87e   :  { %v1471_v46 = vmul.f32 %v1469_v27, %v1465_v38  ;;  %3687 = vmatprep.mubr.msk.f32.mxu0 %vm195_vm4, %v1476_v40  ;;  %v1682_v27 = vrot.slane %v4366_v36, %v1681_v23  ;;  %v1720_v36 = vrot.slane %v4612_v39, %v193_v35 }
 0x880   :  { %v1477_v49 = vadd.f32 %v1475_v30, %v1471_v46 }
 0x882   :  { %3688 = vmatmul.mubr.msk.f32.vlgmr.msra.gmra.mrb[12].mxu0 %vm195_vm4, %v1477_v49 }
 0x883   :  { %3924 = vmatpush3.bf16.msra.mxu0 %v3921_v13 }
 0x884   :  { %3926 = vmatprep.subr.bf16.mxu0 %v3925_v16 }
 0x887   :  { %3928 = vmatpush3.bf16.msra.mxu0 %v3925_v16 }
 0x955   :  { %v3689_v48 = vpop.f32.mrb[12].mxu0 }
 0x956   :  { %v1560_v50 = vadd.f32 %v3689_v48, %v1481_v47  ;;  %v1554_v51 = vpop.f32.mrb[13].mxu0 }
 0x957   :  { %v1555_v52 = vadd.f32 %v1554_v51, %v1481_v47 }
 0x958   :  { %v1564_v56 = vmax.f32 %v1560_v50, 0.0 }
 0x959   :  { %v1563_v54 = vmax.f32 %v1555_v52, 0.0 }
 0x95b   :  { %3706 = vmatprep.mubr.msk.f32.mxu1 %vm1569_vm8, %v1563_v54 }
 0x95c   :  { %3707 = vmatmul.mubr.msk.f32.vlgmr.msra.gmra.mrb[16].mxu1 %vm1569_vm8, %v1564_v56 }
 0xa2f   :  { %v3708_v58 = vpop.f32.mrb[16].mxu1 }
 0xa30   :  { %v1648_v59 = vadd.f32 %v3708_v58, %v1568_v57  ;;  %v1642_v42 = vpop.f32.mrb[17].mxu1 }
 0xa31   :  { %v1643_v60 = vadd.f32 %v1642_v42, %v1568_v57 }
 0xa32   :  { %v1652_v61 = vadd.f32 %v1648_v59, %v1477_v49 }
 0xa33   :  { %v1651_v62 = vadd.f32 %v1643_v60, %v1476_v40 }
 0xa34   :  { %v1656_v63 = vsel %vm195_vm4, %v1652_v61, 0.0 }
 0xa35   :  { %1657 = vadd.xlane.f32.xlu0 %v1656_v63  ;;  %v1653_v0 = vsel %vm195_vm4, %v1651_v62, 0.0 }
 0xa36   :  { %1654 = vadd.xlane.f32.xlu1 %v1653_v0 }
 0xac2   :  { %v1658_v1 = vpop.xlane.xlu0 %1657 }
 0xac3   :  { %v1660_v2 = vmul.f32 0.03125, %v1658_v1  ;;  %v1655_v33 = vpop.xlane.xlu1 %1654 }
 0xac4   :  { %v1659_v32 = vmul.f32 0.03125, %v1655_v33 }
 0xac5   :  { %v1662_v3 = vsub.f32 %v1652_v61, %v1660_v2 }
 0xac6   :  { %v1661_v4 = vsub.f32 %v1651_v62, %v1659_v32 }
 0xac7   :  { %v1664_v5 = vmul.f32 %v1662_v3, %v1662_v3 }
 0xac8   :  { %v1663_v7 = vmul.f32 %v1661_v4, %v1661_v4 }
 0xac9   :  { %v1668_v8 = vsel %vm195_vm4, %v1664_v5, 0.0 }
 0xaca   :  { %1669 = vadd.xlane.f32.xlu0 %v1668_v8  ;;  %v1665_v10 = vsel %vm195_vm4, %v1663_v7, 0.0 }
 0xacb   :  { %1666 = vadd.xlane.f32.xlu1 %v1665_v10 }
 0xb57   :  { %v1670_v17 = vpop.xlane.xlu0 %1669 }
 0xb58   :  { %v1672_v18 = vmul.f32 0.03125, %v1670_v17  ;;  %v1667_v19 = vpop.xlane.xlu1 %1666 }
 0xb59   :  { %v1671_v20 = vmul.f32 0.03125, %v1667_v19 }
 0xb5a   :  { %v1674_v21 = vadd.f32 1e-05, %v1672_v18 }
 0xb5b   :  { %v1673_v22 = vadd.f32 1e-05, %v1671_v20 }
 0xb5c   :  { %4129 = vrsqrt.f32 %v1674_v21 }
 0xb5d   :  { %4131 = vrsqrt.f32 %v1673_v22 }
 0xb66   :  { %v4130_v28 = vpop.eup %4129 }
 0xb67   :  { %v4132_v29 = vpop.eup %4131  ;;  %v1678_v30 = vmul.f32 %v4130_v28, %v1662_v3 }
 0xb68   :  { %v1677_v31 = vmul.f32 %v4132_v29, %v1661_v4 }
 0xb69   :  { %v1684_v38 = vmul.f32 %v1682_v27, %v1678_v30 }
 0xb6a   :  { %v1683_v40 = vmul.f32 %v1682_v27, %v1677_v31 }
 0xb6b   :  { %v4603_v49 = vadd.f32 %v1688_v37, %v1684_v38 }
 0xb6c   :  { %v4601_v46 = vadd.f32 %v1688_v37, %v1683_v40 }
 0xb6e   :  { %3717 = vmatprep.mubr.msk.f32.mxu0 %vm195_vm4, %v4601_v46 }
 0xb6f   :  { %3718 = vmatmul.mubr.msk.f32.vlgmr.msra.gmra.mrb[14].mxu0 %vm195_vm4, %v4603_v49 }
 0xc42   :  { %v3719_v43 = vpop.f32.mrb[14].mxu0 }
 0xc43   :  { %v1799_v44 = vadd.f32 %v3719_v43, %v1720_v36  ;;  %v1793_v47 = vpop.f32.mrb[15].mxu0 }
 0xc44   :  { %v1794_v48 = vadd.f32 %v1793_v47, %v1720_v36 }
 0xc45   :  { %1810 = vrot.lane.b32.xlu1 %v1799_v44, %s4227_s23  ;;  %1806 = vrot.lane.b32.xlu0 %v1799_v44, %s4226_s1 }
 0xc46   :  { %3724 = vmatprep.mubr.msk.f32.mxu0 %vm295_vm5, %v1794_v48  ;;  %v4622_v50 = vpack.i.bf16 %v1799_v44, %v1794_v48 }
 0xc49   :  { %1812 = vrot.lane.b32.xlu0 %v1794_v48, %s4228_s24  ;;  %1804 = vrot.lane.b32.xlu1 %v1794_v48, %s4226_s1 }
 0xc4d   :  { %4054 = vrot.lane.b32.xlu0 %v4622_v50, %s4229_s25  ;;  %1808 = vrot.lane.b32.xlu1 %v1794_v48, %s4227_s23 }
 0xc51   :  { %1814 = vrot.lane.b32.xlu1 %v1799_v44, %s4228_s24 }
 0xcb7   :  { %v1811_v35 = vpop.permute.xlu1 %1810  ;;  %v1807_v51 = vpop.permute.xlu0 %1806 }
 0xcbb   :  { %v1813_v52 = vpop.permute.xlu0 %1812  ;;  %v1805_v54 = vpop.permute.xlu1 %1804 }
 0xcbc   :  { %v4628_v56 = vpack.i.bf16 %v1807_v51, %v1805_v54  ;;  %3731 = vmatprep.mubr.msk.f32.mxu1 %vm295_vm5, %v1805_v54 }
 0xcbe   :  { %4059 = vrot.lane.b32.xlu1 %v4628_v56, %s4229_s25 }
 0xcbf   :  { %v4055_v57 = vpop.permute.xlu0 %4054  ;;  %v1809_v58 = vpop.permute.xlu1 %1808 }
 0xcc0   :  { %v4057_v59 = vunpack.i.h.bf16 %v4055_v57  ;;  %v4056_v42 = vunpack.i.l.bf16 %v4055_v57  ;;  %v4633_v60 = vpack.i.bf16 %v1811_v35, %v1809_v58 }
 0xcc2   :  { %v3929_v61 = vpack.c.bf16 %v4057_v59, %v4056_v42  ;;  %4064 = vrot.lane.b32.xlu0 %v4633_v60, %s4229_s25 }
 0xcc3   :  { %v1815_v62 = vpop.permute.xlu1 %1814 }
 0xcc4   :  { %v4637_v63 = vpack.i.bf16 %v1815_v62, %v1813_v52  ;;  %3931 = vmatprep.subr.msk.bf16.mxu0 %vm4393_vm6, %v3929_v61 }
 0xcc5   :  { %3934 = vmatpush3.bf16.xpose.msk.msra.mxu0 %vm4393_vm6, %v3929_v61 }
 0xcc6   :  { %4069 = vrot.lane.b32.xlu1 %v4637_v63, %s4229_s25 }
 0xccc   :  { %3725 = vmatmul.mubr.msk.f32.vlgmr.msra.gmra.mrb[16].mxu0 %vm295_vm5, %v1799_v44 }
 0xccd   :  { %3738 = vmatprep.mubr.msk.f32.mxu0 %vm295_vm5, %v1809_v58 }
 0xd30   :  { %v4060_v0 = vpop.permute.xlu1 %4059 }
 0xd31   :  { %v4062_v1 = vunpack.i.h.bf16 %v4060_v0  ;;  %v4061_v2 = vunpack.i.l.bf16 %v4060_v0 }
 0xd33   :  { %v3935_v33 = vpack.c.bf16 %v4062_v1, %v4061_v2 }
 0xd34   :  { %v4065_v32 = vpop.permute.xlu0 %4064 }
 0xd35   :  { %v4067_v3 = vunpack.i.h.bf16 %v4065_v32  ;;  %v4066_v4 = vunpack.i.l.bf16 %v4065_v32  ;;  %3937 = vmatprep.subr.msk.bf16.mxu1 %vm4393_vm6, %v3935_v33 }
 0xd36   :  { %3940 = vmatpush3.bf16.xpose.msk.msra.mxu1 %vm4393_vm6, %v3935_v33 }
 0xd37   :  { %v3941_v5 = vpack.c.bf16 %v4067_v3, %v4066_v4 }
 0xd38   :  { %v4070_v7 = vpop.permute.xlu1 %4069 }
 0xd39   :  { %v4072_v8 = vunpack.i.h.bf16 %v4070_v7  ;;  %v4071_v10 = vunpack.i.l.bf16 %v4070_v7  ;;  %3943 = vmatprep.subr.msk.bf16.mxu0 %vm4393_vm6, %v3941_v5 }
 0xd3a   :  { %3946 = vmatpush3.bf16.xpose.msk.msra.mxu0 %vm4393_vm6, %v3941_v5 }
 0xd3b   :  { %v3947_v11 = vpack.c.bf16 %v4072_v8, %v4071_v10 }
 0xd3d   :  { %3732 = vmatmul.mubr.msk.f32.vlgmr.msra.gmra.mrb[18].mxu1 %vm295_vm5, %v1807_v51  ;;  %3949 = vmatprep.subr.msk.bf16.mxu1 %vm4393_vm6, %v3947_v11 }
 0xd3e   :  { %3952 = vmatpush3.bf16.xpose.msk.msra.mxu1 %vm4393_vm6, %v3947_v11  ;;  %3745 = vmatprep.mubr.msk.f32.mxu1 %vm295_vm5, %v1813_v52 }
 0xd41   :  { %3739 = vmatmul.mubr.msk.f32.vlgmr.msra.gmra.mrb[18].mxu0 %vm295_vm5, %v1811_v35 }
 0xd45   :  { %3746 = vmatmul.mubr.msk.f32.vlgmr.msra.gmra.mrb[20].mxu1 %vm295_vm5, %v1815_v62 }
 0xd9f   :  { %v3726_v12 = vpop.f32.mrb[16].mxu0 }
 0xda0   :  { %v2165_v13 = vmul.f32 0.35355338, %v3726_v12  ;;  %v1894_v14 = vpop.f32.mrb[17].mxu0 }
 0xda1   :  { %v2164_v15 = vmul.f32 0.35355338, %v1894_v14 }
 0xda2   :  { %v2173_v16 = vadd.f32 %v2165_v13, %v4423_v6 }
 0xda3   :  { %v2172_v17 = vadd.f32 %v2164_v15, %v4425_v9 }
 0xda4   :  { %v2183_v18 = vsel %vm656_vm7, %v2173_v16, -inf }
 0xda5   :  { %2184 = vmax.xlane.f32.xlu1 %v2183_v18  ;;  %v2180_v53 = vsel %vm656_vm7, %v2172_v17, -inf }
 0xda6   :  { %2181 = vmax.xlane.f32.xlu0 %v2180_v53 }
 0xe10   :  { %v3733_v19 = vpop.f32.mrb[18].mxu1 }
 0xe11   :  { %v2167_v20 = vmul.f32 0.35355338, %v3733_v19  ;;  %v1981_v21 = vpop.f32.mrb[19].mxu1 }
 0xe12   :  { %v2166_v22 = vmul.f32 0.35355338, %v1981_v21 }
 0xe13   :  { %v2175_v27 = vadd.f32 %v2167_v20, %v4423_v6 }
 0xe14   :  { %v3740_v28 = vpop.f32.mrb[18].mxu0  ;;  %v2174_v37 = vadd.f32 %v2166_v22, %v4425_v9 }
 0xe15   :  { %v2169_v29 = vmul.f32 0.35355338, %v3740_v28  ;;  %v2068_v30 = vpop.f32.mrb[19].mxu0  ;;  %v2189_v31 = vsel %vm656_vm7, %v2175_v27, -inf }
 0xe16   :  { %v2168_v38 = vmul.f32 0.35355338, %v2068_v30  ;;  %2190 = vmax.xlane.f32.xlu0 %v2189_v31  ;;  %v2186_v47 = vsel %vm656_vm7, %v2174_v37, -inf }
 0xe17   :  { %v2177_v48 = vadd.f32 %v2169_v29, %v4423_v6 }
 0xe18   :  { %v3747_v40 = vpop.f32.mrb[20].mxu1  ;;  %v2176_v36 = vadd.f32 %v2168_v38, %v4425_v9 }
 0xe19   :  { %v2171_v43 = vmul.f32 0.35355338, %v3747_v40  ;;  %v2155_v44 = vpop.f32.mrb[21].mxu1  ;;  %v2195_v54 = vsel %vm656_vm7, %v2177_v48, -inf }
 0xe1a   :  { %v2170_v35 = vmul.f32 0.35355338, %v2155_v44  ;;  %2187 = vmax.xlane.f32.xlu0 %v2186_v47  ;;  %v2192_v51 = vsel %vm656_vm7, %v2176_v36, -inf }
 0xe1b   :  { %2193 = vmax.xlane.f32.xlu1 %v2192_v51  ;;  %v2179_v57 = vadd.f32 %v2171_v43, %v4423_v6 }
 0xe1c   :  { %v4675_v52 = vadd.f32 %v2170_v35, %v4425_v9 }
 0xe1d   :  { %v2201_v59 = vsel %vm656_vm7, %v2179_v57, -inf }
 0xe1e   :  { %2196 = vmax.xlane.f32.xlu0 %v2195_v54  ;;  %v2198_v58 = vsel %vm656_vm7, %v4675_v52, -inf }
 0xe1f   :  { %2199 = vmax.xlane.f32.xlu1 %v2198_v58 }
 0xe22   :  { %2202 = vmax.xlane.f32.xlu0 %v2201_v59 }
 0xe30   :  { %4074 = vrot.lane.b32.xlu1 %v4622_v50, %s4230_s26 }
 0xe32   :  { %v2185_v42 = vpop.xlane.xlu1 %2184 }
 0xe33   :  { %v2205_v61 = vsub.f32 %v2173_v16, %v2185_v42  ;;  %v2182_v9 = vpop.xlane.xlu0 %2181 }
 0xe34   :  { %v2204_v0 = vsub.f32 %v2172_v17, %v2182_v9 }
 0xe35   :  { %v2214_v62 = vmul.f32 1.442695, %v2205_v61 }
 0xe36   :  { %v2212_v6 = vmul.f32 1.442695, %v2204_v0 }
 0xe37   :  { %4133 = vpow2.f32 %v2214_v62 }
 0xe38   :  { %4135 = vpow2.f32 %v2212_v6 }
 0xe41   :  { %v4684_v1 = vpop.eup %4133 }
 0xe42   :  { %v2231_v2 = vsel %vm656_vm7, %v4684_v1, 0.0  ;;  %v4136_v33 = vpop.eup %4135 }
 0xe43   :  { %2232 = vadd.xlane.f32.xlu0 %v2231_v2  ;;  %v2228_v32 = vsel %vm656_vm7, %v4136_v33, 0.0 }
 0xe54   :  { %2229 = vadd.xlane.f32.xlu1 %v2228_v32 }
 0xea3   :  { %v2191_v3 = vpop.xlane.xlu0 %2190 }
 0xea4   :  { %v2207_v50 = vsub.f32 %v2175_v27, %v2191_v3 }
 0xea6   :  { %v2218_v4 = vmul.f32 1.442695, %v2207_v50 }
 0xea7   :  { %v2188_v5 = vpop.xlane.xlu0 %2187 }
 0xea8   :  { %4137 = vpow2.f32 %v2218_v4  ;;  %v2206_v7 = vsub.f32 %v2174_v37, %v2188_v5  ;;  %v2194_v8 = vpop.xlane.xlu1 %2193 }
 0xea9   :  { %v2208_v10 = vsub.f32 %v2176_v36, %v2194_v8 }
 0xeaa   :  { %v2216_v11 = vmul.f32 1.442695, %v2206_v7 }
 0xeab   :  { %v2220_v12 = vmul.f32 1.442695, %v2208_v10  ;;  %v2197_v13 = vpop.xlane.xlu0 %2196 }
 0xeac   :  { %4139 = vpow2.f32 %v2216_v11  ;;  %v2209_v14 = vsub.f32 %v2177_v48, %v2197_v13  ;;  %v2200_v15 = vpop.xlane.xlu1 %2199 }
 0xead   :  { %4141 = vpow2.f32 %v2220_v12  ;;  %v2210_v44 = vsub.f32 %v4675_v52, %v2200_v15 }
 0xeae   :  { %v2222_v16 = vmul.f32 1.442695, %v2209_v14 }
 0xeaf   :  { %v2203_v17 = vpop.xlane.xlu0 %2202  ;;  %v2224_v48 = vmul.f32 1.442695, %v2210_v44 }
 0xeb0   :  { %4143 = vpow2.f32 %v2222_v16  ;;  %v2211_v18 = vsub.f32 %v2179_v57, %v2203_v17  ;;  %v4075_v53 = vpop.permute.xlu1 %4074 }
 0xeb1   :  { %v4077_v19 = vunpack.i.h.bf16 %v4075_v53  ;;  %v4076_v20 = vunpack.i.l.bf16 %v4075_v53 }
 0xeb2   :  { %v4689_v21 = vpop.eup %4137  ;;  %v2226_v22 = vmul.f32 1.442695, %v2211_v18 }
 0xeb3   :  { %v3953_v27 = vpack.c.bf16 %v4077_v19, %v4076_v20  ;;  %v2237_v28 = vsel %vm656_vm7, %v4689_v21, 0.0 }
 0xeb4   :  { %4145 = vpow2.f32 %v2226_v22  ;;  %2238 = vadd.xlane.f32.xlu0 %v2237_v28  ;;  %v3371_v22 = vld [vmem:[%s4855_s5 + $0x28] sm:$0xff] }
 0xeb5   :  { %3954 = vmatprep.subr.bf16.mxu0 %v3953_v27 }
 0xeb6   :  { %v4140_v29 = vpop.eup %4139  ;;  %3956 = vmatpush3.bf16.msra.mxu0 %v3953_v27  ;;  %v3373_v27 = vld [vmem:[%s4855_s5 + $0x38] sm:$0xff] }
 0xeb7   :  { %v2234_v30 = vsel %vm656_vm7, %v4140_v29, 0.0  ;;  %v4142_v31 = vpop.eup %4141 }
 0xeb8   :  { %2235 = vadd.xlane.f32.xlu1 %v2234_v30  ;;  %v2240_v40 = vsel %vm656_vm7, %v4142_v31, 0.0 }
 0xeba   :  { %v4144_v37 = vpop.eup %4143 }
 0xebb   :  { %v2243_v38 = vsel %vm656_vm7, %v4144_v37, 0.0 }
 0xebc   :  { %2244 = vadd.xlane.f32.xlu0 %v2243_v38  ;;  %2241 = vadd.xlane.f32.xlu1 %v2240_v40 }
 0xebe   :  { %v4696_v36 = vpop.eup %4145 }
 0xebf   :  { %v2249_v43 = vsel %vm656_vm7, %v4696_v36, 0.0 }
 0xec0   :  { %2250 = vadd.xlane.f32.xlu0 %v2249_v43 }
 0xecd   :  { %4084 = vrot.lane.b32.xlu1 %v4633_v60, %s4230_s26 }
 0xed0   :  { %v2233_v47 = vpop.xlane.xlu0 %2232 }
 0xed1   :  { %4147 = vrcp.f32 %v2233_v47 }
 0xed6   :  { %4079 = vrot.lane.b32.xlu0 %v4628_v56, %s4230_s26 }
 0xedb   :  { %v4148_v51 = vpop.eup %4147 }
 0xedc   :  { %v2261_v59 = vmul.f32 %v4148_v51, %v4684_v1 }
 0xee1   :  { %v2230_v35 = vpop.xlane.xlu1 %2229 }
 0xee2   :  { %4149 = vrcp.f32 %v2230_v35 }
 0xee3   :  { %4151 = vpow2.f32 %v2224_v48 }
 0xeec   :  { %v4150_v54 = vpop.eup %4149 }
 0xeed   :  { %v4152_v57 = vpop.eup %4151  ;;  %v2260_v58 = vmul.f32 %v4150_v54, %v4136_v33 }
 0xeee   :  { %v2246_v56 = vsel %vm656_vm7, %v4152_v57, 0.0 }
 0xeef   :  { %3752 = vmatprep.mubr.msk.f32.mxu0 %vm656_vm7, %v2260_v58 }
 0xef0   :  { %3753 = vmatmul.mubr.msk.f32.vlgmr.msra.gmra.mrb[20].mxu0 %vm656_vm7, %v2261_v59 }
 0xef1   :  { %2247 = vadd.xlane.f32.xlu1 %v2246_v56 }
 0xf02   :  { %4089 = vrot.lane.b32.xlu1 %v4637_v63, %s4230_s26  ;;  %v3370_v63 = vld [vmem:[%s4855_s5 + $0x20] sm:$0xff] }
 0xf41   :  { %v2239_v60 = vpop.xlane.xlu0 %2238 }
 0xf45   :  { %v2236_v52 = vpop.xlane.xlu1 %2235 }
 0xf46   :  { %4153 = vrcp.f32 %v2236_v52 }
 0xf47   :  { %4155 = vrcp.f32 %v2239_v60 }
 0xf49   :  { %v2245_v42 = vpop.xlane.xlu0 %2244  ;;  %v2242_v61 = vpop.xlane.xlu1 %2241 }
 0xf4a   :  { %4157 = vrcp.f32 %v2245_v42 }
 0xf4b   :  { %4159 = vrcp.f32 %v2242_v61 }
 0xf4d   :  { %v2251_v62 = vpop.xlane.xlu0 %2250  ;;  %v4085_v9 = vpop.permute.xlu1 %4084 }
 0xf4e   :  { %v4087_v0 = vunpack.i.h.bf16 %v4085_v9  ;;  %v4086_v1 = vunpack.i.l.bf16 %v4085_v9  ;;  %4161 = vrcp.f32 %v2251_v62 }
 0xf50   :  { %v4154_v6 = vpop.eup %4153  ;;  %v3961_v2 = vpack.c.bf16 %v4087_v0, %v4086_v1  ;;  %v2957_v0 = vrot.slane %v4612_v39, %v1433_v41 }
 0xf51   :  { %v4080_v33 = vpop.permute.xlu0 %4079  ;;  %v2262_v32 = vmul.f32 %v4154_v6, %v4140_v29  ;;  %v4156_v4 = vpop.eup %4155 }
 0xf52   :  { %v4082_v3 = vunpack.i.h.bf16 %v4080_v33  ;;  %v4081_v50 = vunpack.i.l.bf16 %v4080_v33  ;;  %3962 = vmatprep.subr.bf16.mxu0 %v3961_v2  ;;  %v2263_v12 = vmul.f32 %v4156_v4, %v4689_v21  ;;  %v3372_v21 = vld [vmem:[%s4855_s5 + $0x30] sm:$0xff] }
 0xf53   :  { %3759 = vmatprep.mubr.msk.f32.mxu1 %vm656_vm7, %v2262_v32  ;;  %3964 = vmatpush3.bf16.msra.mxu0 %v3961_v2 }
 0xf54   :  { %v4158_v5 = vpop.eup %4157  ;;  %v3957_v7 = vpack.c.bf16 %v4082_v3, %v4081_v50  ;;  %3776 = vmatprep.subr.mxu0 %v3370_v63 }
 0xf55   :  { %v4160_v8 = vpop.eup %4159  ;;  %v2265_v10 = vmul.f32 %v4158_v5, %v4144_v37 }
 0xf56   :  { %3958 = vmatprep.subr.bf16.mxu1 %v3957_v7  ;;  %v2264_v11 = vmul.f32 %v4160_v8, %v4142_v31 }
 0xf57   :  { %3960 = vmatpush3.bf16.msra.mxu1 %v3957_v7 }
 0xf58   :  { %3766 = vmatprep.mubr.msk.f32.mxu0 %vm656_vm7, %v2264_v11  ;;  %v4162_v18 = vpop.eup %4161 }
 0xf59   :  { %3767 = vmatmul.mubr.msk.f32.vlgmr.msra.gmra.mrb[22].mxu0 %vm656_vm7, %v2265_v10  ;;  %v2267_v20 = vmul.f32 %v4162_v18, %v4696_v36 }
 0xf5a   :  { %3760 = vmatmul.mubr.msk.f32.vlgmr.msra.gmra.mrb[22].mxu1 %vm656_vm7, %v2263_v12  ;;  %3777 = vmatpush3.msra.mxu0 %v3370_v63 }
 0xf5b   :  { %3786 = vmatprep.subr.mxu0 %v3372_v21 }
 0xf7e   :  { %v2248_v13 = vpop.xlane.xlu1 %2247 }
 0xf7f   :  { %4163 = vrcp.f32 %v2248_v13 }
 0xf82   :  { %v4090_v14 = vpop.permute.xlu1 %4089 }
 0xf83   :  { %v4092_v15 = vunpack.i.h.bf16 %v4090_v14  ;;  %v4091_v16 = vunpack.i.l.bf16 %v4090_v14 }
 0xf85   :  { %v3965_v17 = vpack.c.bf16 %v4092_v15, %v4091_v16 }
 0xf87   :  { %3966 = vmatprep.subr.bf16.mxu1 %v3965_v17 }
 0xf88   :  { %3968 = vmatpush3.bf16.msra.mxu1 %v3965_v17  ;;  %v3375_v17 = vld [vmem:[%s4856_s6 + $0x28] sm:$0xff] }
 0xf89   :  { %v4164_v53 = vpop.eup %4163  ;;  %3781 = vmatprep.subr.mxu1 %v3371_v22 }
 0xf8a   :  { %v2266_v19 = vmul.f32 %v4164_v53, %v4152_v57  ;;  %v3376_v53 = vld [vmem:[%s4856_s6 + $0x30] sm:$0xff] }
 0xf8c   :  { %3773 = vmatprep.mubr.msk.f32.mxu1 %vm656_vm7, %v2266_v19  ;;  %v3377_v19 = vld [vmem:[%s4856_s6 + $0x38] sm:$0xff] }
 0xf8d   :  { %3774 = vmatmul.mubr.msk.f32.vlgmr.msra.gmra.mrb[24].mxu1 %vm656_vm7, %v2267_v20  ;;  %v3973_v20 = vpack.c.bf16 %v3377_v19, %v3376_v53  ;;  %v3214_v53 = vld [vmem:[%s4859_s9 + $0x10] sm:$0xff]  ;;  %v3215_v19 = vld [vmem:[%s4859_s9 + $0x18] sm:$0xff] }
 0xf8e   :  { %3782 = vmatpush3.msra.mxu1 %v3371_v22  ;;  %v3379_v22 = vld [vmem:[%s4857_s7 + $0x48] sm:$0xff] }
 0xf8f   :  { %3791 = vmatprep.subr.mxu1 %v3373_v27 }
 0xfc3   :  { %v3754_v28 = vpop.f32.mrb[20].mxu0 }
 0xfc4   :  { %v2346_v29 = vpop.f32.mrb[21].mxu0 }
 0xfc5   :  { %3778 = vmatprep.mubr.msk.f32.mxu0 %vm295_vm5, %v2346_v29  ;;  %v3381_v29 = vld [vmem:[%s4857_s7 + $0x58] sm:$0xff] }
 0xfc6   :  { %3779 = vmatmul.mubr.msk.f32.vlgmr.msra.gmra.mrb[24].mxu0 %vm295_vm5, %v3754_v28 }
 0xfc7   :  { %3787 = vmatpush3.msra.mxu0 %v3372_v21  ;;  %v3378_v21 = vld [vmem:[%s4857_s7 + $0x40] sm:$0xff] }
 0xfc8   :  { %v3977_v28 = vpack.c.bf16 %v3379_v22, %v3378_v21 }
0x102c   :  { %v3768_v30 = vpop.f32.mrb[22].mxu0 }
0x102d   :  { %v2520_v31 = vpop.f32.mrb[23].mxu0  ;;  %v3761_v37 = vpop.f32.mrb[22].mxu1 }
0x102e   :  { %3788 = vmatprep.mubr.msk.f32.mxu0 %vm295_vm5, %v2520_v31  ;;  %v2433_v38 = vpop.f32.mrb[23].mxu1  ;;  %v3382_v31 = vld [vmem:[%s4857_s7 + $0x60] sm:$0xff] }
0x102f   :  { %3789 = vmatmul.mubr.msk.f32.vlgmr.msra.gmra.mrb[26].mxu0 %vm295_vm5, %v3768_v30  ;;  %3783 = vmatprep.mubr.msk.f32.mxu1 %vm295_vm5, %v2433_v38 }
0x1030   :  { %3784 = vmatmul.mubr.msk.f32.vlgmr.msra.gmra.mrb[26].mxu1 %vm295_vm5, %v3761_v37  ;;  %v3383_v37 = vld [vmem:[%s4857_s7 + $0x68] sm:$0xff] }
0x1031   :  { %3792 = vmatpush3.msra.mxu1 %v3373_v27  ;;  %v3380_v27 = vld [vmem:[%s4857_s7 + $0x50] sm:$0xff]  ;;  %v3985_v38 = vpack.c.bf16 %v3383_v37, %v3382_v31  ;;  %v3203_v31 = vrot.slane %v4612_v39, %v1681_v23  ;;  %v3425_v23 = vld [vmem:[%s4860_s10] ss:$0 sm:$0xff] }
0x1032   :  { %v3981_v30 = vpack.c.bf16 %v3381_v29, %v3380_v27  ;;  %3978 = vmatprep.subr.bf16.mxu1 %v3977_v28 }
0x1060   :  { %v3775_v40 = vpop.f32.mrb[24].mxu1 }
0x1061   :  { %v2607_v36 = vpop.f32.mrb[25].mxu1 }
0x1062   :  { %3793 = vmatprep.mubr.msk.f32.mxu1 %vm295_vm5, %v2607_v36 }
0x1063   :  { %3794 = vmatmul.mubr.msk.f32.vlgmr.msra.gmra.mrb[28].mxu1 %vm295_vm5, %v3775_v40 }
0x1064   :  { %3980 = vmatpush3.bf16.msra.mxu1 %v3977_v28 }
0x1065   :  { %3982 = vmatprep.subr.bf16.mxu1 %v3981_v30 }
0x1068   :  { %3984 = vmatpush3.bf16.msra.mxu1 %v3981_v30 }
0x1069   :  { %3986 = vmatprep.subr.bf16.mxu1 %v3985_v38 }
0x106c   :  { %3988 = vmatpush3.bf16.msra.mxu1 %v3985_v38 }
0x1099   :  { %v3780_v43 = vpop.f32.mrb[24].mxu0 }
0x109a   :  { %v2688_v44 = vpop.f32.mrb[25].mxu0  ;;  %v2947_v51 = vsel %vm195_vm4, %v3780_v43, 0.0 }
0x109b   :  { %v2940_v58 = vsel %vm195_vm4, %v2688_v44, 0.0 }
0x1102   :  { %v3790_v47 = vpop.f32.mrb[26].mxu0 }
0x1103   :  { %v2850_v48 = vpop.f32.mrb[27].mxu0  ;;  %v3785_v35 = vpop.f32.mrb[26].mxu1  ;;  %v2950_v60 = vsel %vm195_vm4, %v3790_v47, 0.0 }
0x1104   :  { %v2948_v54 = vsel %vm195_vm4, %v3785_v35, 0.0  ;;  %v2769_v57 = vpop.f32.mrb[27].mxu1  ;;  %v2943_v42 = vsel %vm195_vm4, %v2850_v48, 0.0  ;;  %v2991_v35 = vrot.slane %v4612_v39, %v1468_v25  ;;  %v3384_v25 = vld [vmem:[%s4857_s7 + $0x70] sm:$0xff] }
0x1105   :  { %v2949_v59 = vadd.f32 %v2948_v54, %v2947_v51  ;;  %v2941_v56 = vsel %vm195_vm4, %v2769_v57, 0.0  ;;  %v2997_v57 = vrot.slane %v4612_v39, %v1474_v26  ;;  %v3003_v26 = vrot.slane %v4612_v39, %v1480_v45 }
0x1106   :  { %v2942_v52 = vadd.f32 %v2941_v56, %v2940_v58 }
0x1107   :  { %v2951_v61 = vadd.f32 %v2950_v60, %v2949_v59 }
0x1108   :  { %v2944_v62 = vadd.f32 %v2943_v42, %v2942_v52 }
0x1136   :  { %v3795_v9 = vpop.f32.mrb[28].mxu1 }
0x1137   :  { %v2952_v1 = vsel %vm195_vm4, %v3795_v9, 0.0  ;;  %v2931_v6 = vpop.f32.mrb[29].mxu1 }
0x1138   :  { %v2953_v2 = vadd.f32 %v2952_v1, %v2951_v61  ;;  %v2945_v33 = vsel %vm195_vm4, %v2931_v6, 0.0  ;;  %v3385_v61 = vld [vmem:[%s4857_s7 + $0x78] sm:$0xff] }
0x1139   :  { %v2946_v32 = vadd.f32 %v2945_v33, %v2944_v62  ;;  %v3989_v62 = vpack.c.bf16 %v3385_v61, %v3384_v25 }
0x113a   :  { %v2959_v63 = vadd.f32 %v2957_v0, %v2953_v2 }
0x113b   :  { %v2958_v3 = vadd.f32 %v2957_v0, %v2946_v32  ;;  %3990 = vmatprep.subr.bf16.mxu1 %v3989_v62  ;;  %v3090_v32 = vrot.slane %v4612_v39, %v1567_v55 }
0x113c   :  { %v2961_v50 = vadd.f32 %v2959_v63, %v4603_v49  ;;  %3992 = vmatpush3.bf16.msra.mxu1 %v3989_v62 }
0x113d   :  { %v2960_v4 = vadd.f32 %v2958_v3, %v4601_v46  ;;  %v3374_v46 = vld [vmem:[%s4856_s6 + $0x20] sm:$0xff] }
0x113e   :  { %v2965_v5 = vsel %vm195_vm4, %v2961_v50, 0.0  ;;  %v3969_v18 = vpack.c.bf16 %v3375_v17, %v3374_v46  ;;  %v3212_v46 = vld [vmem:[%s4859_s9] sm:$0xff]  ;;  %v3213_v17 = vld [vmem:[%s4859_s9 + $0x8] sm:$0xff] }
0x113f   :  { %2966 = vadd.xlane.f32.xlu1 %v2965_v5  ;;  %v2962_v7 = vsel %vm195_vm4, %v2960_v4, 0.0 }
0x1140   :  { %2963 = vadd.xlane.f32.xlu0 %v2962_v7  ;;  %3970 = vmatprep.subr.bf16.mxu0 %v3969_v18 }
0x1141   :  { %3972 = vmatpush3.bf16.msra.mxu0 %v3969_v18  ;;  %v3993_v18 = vpack.c.bf16 %v3213_v17, %v3212_v46 }
0x1142   :  { %3974 = vmatprep.subr.bf16.mxu0 %v3973_v20 }
0x1145   :  { %3976 = vmatpush3.bf16.msra.mxu0 %v3973_v20  ;;  %v3997_v20 = vpack.c.bf16 %v3215_v19, %v3214_v53 }
0x1146   :  { %3994 = vmatprep.subr.bf16.mxu0 %v3993_v18 }
0x11cc   :  { %v2967_v41 = vpop.xlane.xlu1 %2966 }
0x11cd   :  { %v2969_v8 = vmul.f32 0.03125, %v2967_v41  ;;  %v2964_v10 = vpop.xlane.xlu0 %2963 }
0x11ce   :  { %v2968_v11 = vmul.f32 0.03125, %v2964_v10 }
0x11cf   :  { %v2971_v12 = vsub.f32 %v2961_v50, %v2969_v8 }
0x11d0   :  { %v2970_v13 = vsub.f32 %v2960_v4, %v2968_v11 }
0x11d1   :  { %v2973_v16 = vmul.f32 %v2971_v12, %v2971_v12 }
0x11d2   :  { %v2972_v14 = vmul.f32 %v2970_v13, %v2970_v13 }
0x11d3   :  { %v2977_v49 = vsel %vm195_vm4, %v2973_v16, 0.0 }
0x11d4   :  { %v2974_v15 = vsel %vm195_vm4, %v2972_v14, 0.0 }
0x11d5   :  { %2975 = vadd.xlane.f32.xlu0 %v2974_v15 }
0x11d9   :  { %2978 = vadd.xlane.f32.xlu0 %v2977_v49 }
0x1262   :  { %v2976_v40 = vpop.xlane.xlu0 %2975 }
0x1263   :  { %v2980_v36 = vmul.f32 0.03125, %v2976_v40 }
0x1265   :  { %v2982_v43 = vadd.f32 1e-05, %v2980_v36 }
0x1266   :  { %v2979_v44 = vpop.xlane.xlu0 %2978 }
0x1267   :  { %4165 = vrsqrt.f32 %v2982_v43  ;;  %v2981_v47 = vmul.f32 0.03125, %v2979_v44  ;;  %v3209_v43 = vrot.slane %v4612_v39, %v1687_v24 }
0x1269   :  { %v2983_v48 = vadd.f32 1e-05, %v2981_v47 }
0x126b   :  { %4167 = vrsqrt.f32 %v2983_v48 }
0x1271   :  { %v4166_v51 = vpop.eup %4165 }
0x1272   :  { %v2986_v54 = vmul.f32 %v4166_v51, %v2970_v13 }
0x1274   :  { %v2992_v58 = vmul.f32 %v2991_v35, %v2986_v54 }
0x1275   :  { %v4168_v59 = vpop.eup %4167 }
0x1276   :  { %v2987_v56 = vmul.f32 %v4168_v59, %v2971_v12  ;;  %v2998_v60 = vadd.f32 %v2997_v57, %v2992_v58 }
0x1278   :  { %v2993_v52 = vmul.f32 %v2991_v35, %v2987_v56  ;;  %3804 = vmatprep.mubr.msk.f32.mxu0 %vm195_vm4, %v2998_v60 }
0x127a   :  { %v2999_v42 = vadd.f32 %v2997_v57, %v2993_v52 }
0x127c   :  { %3805 = vmatmul.mubr.msk.f32.vlgmr.msra.gmra.mrb[28].mxu0 %vm195_vm4, %v2999_v42 }
0x127d   :  { %3996 = vmatpush3.bf16.msra.mxu0 %v3993_v18 }
0x127e   :  { %3998 = vmatprep.subr.bf16.mxu0 %v3997_v20 }
0x1281   :  { %4000 = vmatpush3.bf16.msra.mxu0 %v3997_v20 }
0x134f   :  { %v3806_v9 = vpop.f32.mrb[28].mxu0 }
0x1350   :  { %v3082_v0 = vadd.f32 %v3806_v9, %v3003_v26  ;;  %v3076_v1 = vpop.f32.mrb[29].mxu0 }
0x1351   :  { %v3077_v6 = vadd.f32 %v3076_v1, %v3003_v26 }
0x1352   :  { %v3086_v33 = vmax.f32 %v3082_v0, 0.0 }
0x1353   :  { %v3085_v2 = vmax.f32 %v3077_v6, 0.0 }
0x1355   :  { %3823 = vmatprep.mubr.msk.f32.mxu1 %vm1569_vm8, %v3085_v2 }
0x1356   :  { %3824 = vmatmul.mubr.msk.f32.vlgmr.msra.gmra.mrb[30].mxu1 %vm1569_vm8, %v3086_v33 }
0x1429   :  { %v3825_v63 = vpop.f32.mrb[30].mxu1 }
0x142a   :  { %v3169_v3 = vadd.f32 %v3825_v63, %v3090_v32  ;;  %v3163_v50 = vpop.f32.mrb[31].mxu1 }
0x142b   :  { %v3164_v4 = vadd.f32 %v3163_v50, %v3090_v32 }
0x142c   :  { %v3173_v5 = vadd.f32 %v3169_v3, %v2999_v42 }
0x142d   :  { %v3172_v45 = vadd.f32 %v3164_v4, %v2998_v60 }
0x142e   :  { %v3177_v7 = vsel %vm195_vm4, %v3173_v5, 0.0 }
0x142f   :  { %3178 = vadd.xlane.f32.xlu0 %v3177_v7  ;;  %v3174_v41 = vsel %vm195_vm4, %v3172_v45, 0.0 }
0x1430   :  { %3175 = vadd.xlane.f32.xlu1 %v3174_v41 }
0x14bc   :  { %v3179_v8 = vpop.xlane.xlu0 %3178 }
0x14bd   :  { %v3181_v10 = vmul.f32 0.03125, %v3179_v8  ;;  %v3176_v11 = vpop.xlane.xlu1 %3175 }
0x14be   :  { %v3180_v12 = vmul.f32 0.03125, %v3176_v11 }
0x14bf   :  { %v3183_v13 = vsub.f32 %v3173_v5, %v3181_v10 }
0x14c0   :  { %v3182_v14 = vsub.f32 %v3172_v45, %v3180_v12 }
0x14c1   :  { %v3185_v15 = vmul.f32 %v3183_v13, %v3183_v13 }
0x14c2   :  { %v3184_v55 = vmul.f32 %v3182_v14, %v3182_v14 }
0x14c3   :  { %v3189_v16 = vsel %vm195_vm4, %v3185_v15, 0.0 }
0x14c4   :  { %3190 = vadd.xlane.f32.xlu0 %v3189_v16  ;;  %v3186_v49 = vsel %vm195_vm4, %v3184_v55, 0.0 }
0x14c5   :  { %3187 = vadd.xlane.f32.xlu1 %v3186_v49 }
0x1551   :  { %v3191_v21 = vpop.xlane.xlu0 %3190 }
0x1552   :  { %v3193_v22 = vmul.f32 0.03125, %v3191_v21  ;;  %v3188_v27 = vpop.xlane.xlu1 %3187 }
0x1553   :  { %v3192_v28 = vmul.f32 0.03125, %v3188_v27 }
0x1554   :  { %v3195_v29 = vadd.f32 1e-05, %v3193_v22 }
0x1555   :  { %v3194_v30 = vadd.f32 1e-05, %v3192_v28 }
0x1556   :  { %4169 = vrsqrt.f32 %v3195_v29 }
0x1557   :  { %4171 = vrsqrt.f32 %v3194_v30 }
0x1560   :  { %v4170_v37 = vpop.eup %4169 }
0x1561   :  { %v4172_v38 = vpop.eup %4171  ;;  %v3199_v40 = vmul.f32 %v4170_v37, %v3183_v13 }
0x1562   :  { %v3198_v36 = vmul.f32 %v4172_v38, %v3182_v14 }
0x1563   :  { %v3205_v44 = vmul.f32 %v3203_v31, %v3199_v40 }
0x1564   :  { %v3204_v47 = vmul.f32 %v3203_v31, %v3198_v36 }
0x1565   :  { %v3211_v35 = vadd.f32 %v3209_v43, %v3205_v44 }
0x1566   :  { %v3210_v48 = vadd.f32 %v3209_v43, %v3204_v47 }
0x1568   :  { %3834 = vmatprep.mubr.msk.f32.mxu0 %vm195_vm4, %v3210_v48 }
0x1569   :  { %3835 = vmatmul.mubr.msk.f32.vlgmr.msra.gmra.mrb[30].mxu0 %vm195_vm4, %v3211_v35 }
0x163c   :  { %v3836_v51 = vpop.f32.mrb[30].mxu0 }
0x163d   :  { %v3301_v54 = vadd.f32 %v3836_v51, %v3425_v23  ;;  %v3295_v57 = vpop.f32.mrb[31].mxu0 }
0x163e   :  { %v3296_v34 = vadd.f32 %v3425_v23, %v3295_v57 }
0x163f   :  { %3305 = vst [vmem:[#allocation5 + $0x8] sm:$0xff] %v3301_v54 }
0x1640   :  { %3304 = vst [vmem:[#allocation5] sm:$0xff] %v3296_v34 }
0x1641   :  { %4206 = shalt.err (!%p4203_p12)
}
0x1642   :  { %s4207_s10 = scalar_lea.hbm %s4861_s11, 256 }
0x1643   :  { %p4208_p13 = scmp.ne.s32.totalorder %s4861_s11, %s4207_s10  ;;  %p4211_p0 = scmp.lt.u32.totalorder %s4207_s10, %s4861_s11 }
0x1645   :  { %p4213_p1 = pnand %p4211_p0, %p4208_p13 }
0x1647   :  { %4216 = shalt.err (!%p4213_p1)
}
0x1648   :  { %3317 = dma.vmem_to_hbm [thread:$0]  %s3312_s0, 256, %s4861_s11, [#allocation4], %s4222_s27, %s4222_s27, %s4223_s28  }
0x1649   :  { %4219 = dma.done.wait [#allocation4], 256  }
0x164a   :  { %4220 = vsyncadd [#allocation4], 4294967040 }
0x164b   :  { %3321 = vsyncpa [#allocation3], 1 }
0x164c   :  { %3322 = vsyncpa [#allocation4], 1 }

</bundles_post_ra>
